<compile_context>
chip_gen: v7x
topology: tpu7x:2x2x1
jax: 0.10.0
libtpu: 0.0.40
codegen_flags: <defaults>
</compile_context>

<pallas_src>
import functools

import jax
import jax.numpy as jnp
from jax.experimental import pallas as pl
from jax.experimental.pallas import tpu as pltpu


HALO_PAD = 8     # zero-halo rows on each side of a tile (>= 6 needed; 8 keeps sublane alignment)
MAX_TILE = 512   # target L-tile; may be raised to 1024-2048 on v5e/v6e, keep conservative on v7x


def _round_up(x, m):
    return (x + m - 1) // m * m


def _cdiv(a, b):
    return (a + b - 1) // b


# ----------------------------------------------------------------------------
# Pallas kernel: one grid step == one (batch element, L-tile) pair.
# ----------------------------------------------------------------------------
def _resnet_block_kernel(x_ref,                     # (T + 2*PAD, Cin_p) bf16, halo'd tile
                         wx_ref, wy_ref, wz_ref,    # (7,Cin_p,Cout_p) (5,Cout_p,Cout_p) (3,Cout_p,Cout_p) bf16
                         ws_ref,                    # (Cin_p, Cout_p) bf16 (read only when expand)
                         sb_ref,                    # (8, Cout_p) f32: bx, by, bz, ss, bs, 0, 0, 0
                         o_ref,                     # (T, Cout_p) bf16
                         *, T, PAD, L, num_t, expand):
    # Flattened grid: i = n * num_t + t ; local row j of the tile <-> global row g0 - PAD + j.
    t = pl.program_id(0) % num_t
    g0 = t * T

    xw = x_ref[...]                                  # (T + 2*PAD, Cin_p) bf16

    bx = sb_ref[0:1, :]
    by = sb_ref[1:2, :]
    bz = sb_ref[2:3, :]
    ss = sb_ref[3:4, :]
    bs = sb_ref[4:5, :]

    def valid(nrows, g_start):
        # (rows, 1) validity mask for global rows in [0, L); broadcast across lanes by where.
        g = jax.lax.broadcasted_iota(jnp.int32, (nrows, 1), 0) + g_start
        return (g >= 0) & (g < L)

    # conv_x (k=7, pad=3) + bn_x + relu : rows global [g0-5, g0+T+5)
    R1 = T + 10
    h1 = jnp.dot(xw[0:R1, :], wx_ref[0], preferred_element_type=jnp.float32)
    for k in range(1, 7):
        h1 = h1 + jnp.dot(xw[k:k + R1, :], wx_ref[k], preferred_element_type=jnp.float32)
    h1 = jnp.maximum(h1 + bx, 0.0)
    h1 = jnp.where(valid(R1, g0 - 5), h1, 0.0).astype(jnp.bfloat16)

    # conv_y (k=5, pad=2) + bn_y + relu : rows global [g0-3, g0+T+3)
    R2 = T + 6
    h2 = jnp.dot(h1[0:R2, :], wy_ref[0], preferred_element_type=jnp.float32)
    for k in range(1, 5):
        h2 = h2 + jnp.dot(h1[k:k + R2, :], wy_ref[k], preferred_element_type=jnp.float32)
    h2 = jnp.maximum(h2 + by, 0.0)
    h2 = jnp.where(valid(R2, g0 - 3), h2, 0.0).astype(jnp.bfloat16)

    # conv_z (k=3, pad=1) + bn_z : rows global [g0, g0+T)
    h3 = jnp.dot(h2[2:2 + T, :], wz_ref[0], preferred_element_type=jnp.float32)
    for k in range(1, 3):
        h3 = h3 + jnp.dot(h2[2 + k:2 + k + T, :], wz_ref[k], preferred_element_type=jnp.float32)
    h3 = h3 + bz

    # shortcut : rows global [g0, g0+T)
    xc = xw[PAD:PAD + T, :]
    if expand:
        # learned 1x1 conv + bn (scale folded into ws columns)
        sc = jnp.dot(xc, ws_ref[...], preferred_element_type=jnp.float32) + bs
    else:
        # identity shortcut + bn, done in f32 on the VPU (no MXU round-trip)
        sc = xc.astype(jnp.float32) * ss + bs

    # residual add + relu  (rows >= L in the last tile are garbage; wrapper slices them off)
    o_ref[...] = jnp.maximum(h3 + sc, 0.0).astype(o_ref.dtype)


# ----------------------------------------------------------------------------
# Wrapper
# ----------------------------------------------------------------------------
@functools.partial(jax.jit, static_argnames=("cout", "expand"))
def resnet_block_forward(x_ncl, kp, *, cout, expand):
    """x_ncl: (N, Cin, L) float32 (PyTorch layout). kp: folded kernel params."""
    N, cin, L = x_ncl.shape
    cin_p = kp["wx"].shape[1]
    cout_p = kp["sb"].shape[1]
    PAD = HALO_PAD

    # Choose T to minimize padded rows: whole sequence when short, else near-equal tiles.
    if L <= MAX_TILE:
        T = _round_up(L, 8)
    else:
        n_target = _cdiv(L, MAX_TILE)
        T = _round_up(_cdiv(L, n_target), 8)
    num_t = _cdiv(L, T)
    L_p = num_t * T
    W = T + 2 * PAD

    # NCL -> NLC, zero halo + tile-remainder padding, channel pad to 128 lanes, cast bf16.
    x_nlc = jnp.transpose(x_ncl, (0, 2, 1))
    x_pad = jnp.pad(x_nlc, ((0, 0), (PAD, (L_p - L) + PAD), (0, cin_p - cin))).astype(jnp.bfloat16)
    # Overlapping halo'd tiles materialized once in HBM (only 2*PAD/T extra rows), so the
    # kernel input block is small, aligned and auto double-buffered by the pipeline.
    x_tiles = jnp.stack([x_pad[:, t * T: t * T + W, :] for t in range(num_t)], axis=1)
    x_tiles = x_tiles.reshape(N * num_t, W, cin_p)

    kernel = functools.partial(_resnet_block_kernel, T=T, PAD=PAD, L=L,
                               num_t=num_t, expand=expand)

    out_tiles = pl.pallas_call(
        kernel,
        out_shape=jax.ShapeDtypeStruct((N * num_t, T, cout_p), jnp.bfloat16),
        grid_spec=pltpu.PrefetchScalarGridSpec(
            num_scalar_prefetch=0,
            grid=(N * num_t,),
            in_specs=[
                pl.BlockSpec((None, W, cin_p), lambda i: (i, 0, 0)),
                pl.BlockSpec(kp["wx"].shape, lambda i: (0, 0, 0)),
                pl.BlockSpec(kp["wy"].shape, lambda i: (0, 0, 0)),
                pl.BlockSpec(kp["wz"].shape, lambda i: (0, 0, 0)),
                pl.BlockSpec(kp["ws"].shape, lambda i: (0, 0)),
                pl.BlockSpec(kp["sb"].shape, lambda i: (0, 0)),
            ],
            out_specs=pl.BlockSpec((None, T, cout_p), lambda i: (i, 0, 0)),
        ),
        compiler_params=pltpu.CompilerParams(
            dimension_semantics=("parallel",),
            vmem_limit_bytes=32 * 1024 * 1024),
    )(x_tiles, kp["wx"], kp["wy"], kp["wz"], kp["ws"], kp["sb"])

    out = out_tiles.reshape(N, L_p, cout_p)[:, :L, :cout]
    return jnp.transpose(out, (0, 2, 1)).astype(jnp.float32)   # back to NCL f32


# ----------------------------------------------------------------------------
# Deterministic parameter construction (PyTorch shapes), + folding for the kernel.
# ----------------------------------------------------------------------------
def make_torch_style_params(key, cin, cout):
    ks = jax.random.split(key, 24)
    i = iter(range(24))
    nrm = lambda shape, s=0.1: s * jax.random.normal(ks[next(i)], shape, jnp.float32)
    uni = lambda shape: jax.random.uniform(ks[next(i)], shape, jnp.float32, 0.5, 1.5)

    def bn(c):
        return dict(gamma=uni((c,)), beta=nrm((c,)), mean=nrm((c,)), var=uni((c,)))

    p = {
        "conv_x_w": nrm((cout, cin, 7)),  "conv_x_b": nrm((cout,)),
        "conv_y_w": nrm((cout, cout, 5)), "conv_y_b": nrm((cout,)),
        "conv_z_w": nrm((cout, cout, 3)), "conv_z_b": nrm((cout,)),
        "bn_x": bn(cout), "bn_y": bn(cout), "bn_z": bn(cout),
        "bn_s": bn(cout),
        "expand": cin < cout,
    }
    if p["expand"]:
        p["conv_s_w"] = nrm((cout, cin, 1))
        p["conv_s_b"] = nrm((cout,))
    return p


def fold_kernel_params(p, eps=1e-5):
    """Pack conv weights as (K, Cin_p, Cout_p) bf16 with the BN scale folded into the
    output-channel columns (folded in f32, then cast), and fold conv-bias + BN into a
    per-channel bias. sb rows: bx, by, bz, ss(identity-shortcut scale), bs, 0, 0, 0."""
    cout, cin, _ = p["conv_x_w"].shape
    cout_p = _round_up(cout, 128)
    cin_p = _round_up(cin, 128)

    def bn_fold(bn, conv_b):
        s = bn["gamma"] / jnp.sqrt(bn["var"] + eps)
        b = (conv_b - bn["mean"]) * s + bn["beta"]
        return s, b

    def pack_w(w_oik, scale, cinw_p):
        co, ci, _ = w_oik.shape
        w = jnp.transpose(w_oik, (2, 1, 0)) * scale[None, None, :]   # (K, Cin, Cout), f32 fold
        w = jnp.pad(w, ((0, 0), (0, cinw_p - ci), (0, cout_p - co)))
        return w.astype(jnp.bfloat16)

    sx, bx = bn_fold(p["bn_x"], p["conv_x_b"])
    sy, by = bn_fold(p["bn_y"], p["conv_y_b"])
    sz, bz = bn_fold(p["bn_z"], p["conv_z_b"])

    kp = {}
    kp["wx"] = pack_w(p["conv_x_w"], sx, cin_p)
    kp["wy"] = pack_w(p["conv_y_w"], sy, cout_p)
    kp["wz"] = pack_w(p["conv_z_w"], sz, cout_p)

    if p["expand"]:
        ss, bs = bn_fold(p["bn_s"], p["conv_s_b"])
        kp["ws"] = pack_w(p["conv_s_w"], ss, cin_p)[0]               # (Cin_p, Cout_p)
    else:
        assert cin == cout, "identity shortcut requires in_channels == out_channels"
        ss, bs = bn_fold(p["bn_s"], jnp.zeros((cout,), jnp.float32))
        kp["ws"] = jnp.zeros((cin_p, cout_p), jnp.bfloat16)          # unread by the kernel

    padv = lambda v: jnp.pad(v, (0, cout_p - v.shape[0]))
    zeros = jnp.zeros((cout_p,), jnp.float32)
    kp["sb"] = jnp.stack([padv(bx), padv(by), padv(bz), padv(ss), padv(bs),
                          zeros, zeros, zeros], axis=0)              # (8, Cout_p) f32
    return kp


# ----------------------------------------------------------------------------
# Pure-JAX reference (NCL layout, lax conv), for correctness checking.
# ----------------------------------------------------------------------------
def _ref_conv1d(x_ncl, w_oik, b, pad):
    y = jax.lax.conv_general_dilated(
        x_ncl, w_oik, window_strides=(1,), padding=[(pad, pad)],
        dimension_numbers=("NCW", "OIW", "NCW"))
    return y + b[None, :, None]


def _ref_bn(x_ncl, bn, eps=1e-5):
    s = bn["gamma"] / jnp.sqrt(bn["var"] + eps)
    return (x_ncl - bn["mean"][None, :, None]) * s[None, :, None] + bn["beta"][None, :, None]


def resnet_block_reference(x, p):
    out = jax.nn.relu(_ref_bn(_ref_conv1d(x, p["conv_x_w"], p["conv_x_b"], 3), p["bn_x"]))
    out = jax.nn.relu(_ref_bn(_ref_conv1d(out, p["conv_y_w"], p["conv_y_b"], 2), p["bn_y"]))
    out = _ref_bn(_ref_conv1d(out, p["conv_z_w"], p["conv_z_b"], 1), p["bn_z"])
    if p["expand"]:
        x = _ref_conv1d(x, p["conv_s_w"], p["conv_s_b"], 0)
    x = _ref_bn(x, p["bn_s"])
    return jax.nn.relu(out + x)


# ----------------------------------------------------------------------------
if __name__ == "__main__":
    key = jax.random.PRNGKey(0)

    def run_case(key, N, Cin, Cout, L, tol):
        k_param, k_x = jax.random.split(key)
        x = jax.random.normal(k_x, (N, Cin, L), jnp.float32)
        torch_params = make_torch_style_params(k_param, Cin, Cout)
        kernel_params = fold_kernel_params(torch_params)

        out = jax.block_until_ready(
            resnet_block_forward(x, kernel_params, cout=Cout, expand=torch_params["expand"]))
        ref = jax.block_until_ready(resnet_block_reference(x, torch_params))
        assert out.shape == (N, Cout, L), out.shape
        err = float(jnp.max(jnp.abs(out - ref)))
        assert jnp.allclose(out, ref, atol=tol, rtol=tol), err

    # expand path (Cin < Cout triggers the learned 1x1 shortcut)
    k0, k1 = jax.random.split(key)
    run_case(k0, N=2, Cin=4, Cout=8, L=16, tol=4e-2)   # bf16 MXU + bf16 output -> loose tol
    # identity-shortcut path (Cin == Cout)
    run_case(k1, N=2, Cin=8, Cout=8, L=16, tol=4e-2)

    print("KERNEL_OK")
</pallas_src>

<mosaic_0001>
module attributes {stable_mosaic.version = 11 : i64} {
  func.func @_resnet_block_kernel(%arg0: i32, %arg1: memref<1x32x128xbf16, #tpu.memory_space<vmem>>, %arg2: memref<7x128x128xbf16, #tpu.memory_space<vmem>>, %arg3: memref<5x128x128xbf16, #tpu.memory_space<vmem>>, %arg4: memref<3x128x128xbf16, #tpu.memory_space<vmem>>, %arg5: memref<128x128xbf16, #tpu.memory_space<vmem>>, %arg6: memref<8x128xf32, #tpu.memory_space<vmem>>, %arg7: memref<1x16x128xbf16, #tpu.memory_space<vmem>>) attributes {dimension_semantics = [#tpu.dimension_semantics<parallel>], iteration_bounds = array<i64: 2>, scalar_prefetch = 0 : i64, scratch_operands = 0 : i64, tpu.core_type = #tpu.core_type<tc>, window_params = [{transform_indices = @transform_0, window_bounds = array<i64: 1, 32, 128>}, {pipeline_mode = #tpu.pipeline_mode<synchronous>, transform_indices = @transform_1, window_bounds = array<i64: 7, 128, 128>}, {pipeline_mode = #tpu.pipeline_mode<synchronous>, transform_indices = @transform_2, window_bounds = array<i64: 5, 128, 128>}, {pipeline_mode = #tpu.pipeline_mode<synchronous>, transform_indices = @transform_3, window_bounds = array<i64: 3, 128, 128>}, {pipeline_mode = #tpu.pipeline_mode<synchronous>, transform_indices = @transform_4, window_bounds = array<i64: 128, 128>}, {pipeline_mode = #tpu.pipeline_mode<synchronous>, transform_indices = @transform_5, window_bounds = array<i64: 8, 128>}, {transform_indices = @transform_6, window_bounds = array<i64: 1, 16, 128>}]} {
    %c1_i32 = arith.constant 1 : i32
    %c0_i32 = arith.constant 0 : i32
    %0 = arith.cmpi eq, %c1_i32, %c0_i32 : i32
    %c1_i32_0 = arith.constant 1 : i32
    %1 = arith.select %0, %c1_i32_0, %c1_i32 : i32
    %2 = arith.remsi %arg0, %1 : i32
    %c0_i32_1 = arith.constant 0 : i32
    %3 = arith.cmpi ne, %2, %c0_i32_1 : i32
    %c0_i32_2 = arith.constant 0 : i32
    %4 = arith.cmpi slt, %2, %c0_i32_2 : i32
    %c0_i32_3 = arith.constant 0 : i32
    %5 = arith.cmpi slt, %1, %c0_i32_3 : i32
    %6 = arith.xori %4, %5 : i1
    %7 = arith.andi %6, %3 : i1
    %8 = arith.addi %2, %1 : i32
    %9 = arith.select %7, %8, %2 : i32
    %c16_i32 = arith.constant 16 : i32
    %10 = arith.muli %9, %c16_i32 : i32
    %c0 = arith.constant 0 : index
    %c0_4 = arith.constant 0 : index
    %c0_5 = arith.constant 0 : index
    %11 = vector.load %arg1[%c0, %c0_4, %c0_5] : memref<1x32x128xbf16, #tpu.memory_space<vmem>>, vector<1x32x128xbf16>
    %12 = vector.shape_cast %11 : vector<1x32x128xbf16> to vector<32x128xbf16>
    %c0_6 = arith.constant 0 : index
    %c0_7 = arith.constant 0 : index
    %13 = vector.load %arg6[%c0_6, %c0_7] : memref<8x128xf32, #tpu.memory_space<vmem>>, vector<1x128xf32>
    %c1 = arith.constant 1 : index
    %c0_8 = arith.constant 0 : index
    %14 = vector.load %arg6[%c1, %c0_8] : memref<8x128xf32, #tpu.memory_space<vmem>>, vector<1x128xf32>
    %c2 = arith.constant 2 : index
    %c0_9 = arith.constant 0 : index
    %15 = vector.load %arg6[%c2, %c0_9] : memref<8x128xf32, #tpu.memory_space<vmem>>, vector<1x128xf32>
    %c4 = arith.constant 4 : index
    %c0_10 = arith.constant 0 : index
    %16 = vector.load %arg6[%c4, %c0_10] : memref<8x128xf32, #tpu.memory_space<vmem>>, vector<1x128xf32>
    %17 = vector.extract_strided_slice %12 {offsets = [0, 0], sizes = [26, 128], strides = [1, 1]} : vector<32x128xbf16> to vector<26x128xbf16>
    %c0_11 = arith.constant 0 : index
    %c0_12 = arith.constant 0 : index
    %c0_13 = arith.constant 0 : index
    %18 = vector.load %arg2[%c0_11, %c0_12, %c0_13] : memref<7x128x128xbf16, #tpu.memory_space<vmem>>, vector<1x128x128xbf16>
    %19 = vector.shape_cast %18 : vector<1x128x128xbf16> to vector<128x128xbf16>
    %cst = arith.constant dense<0.000000e+00> : vector<26x128xf32>
    %20 = tpu.matmul %17, %19, %cst {dimension_numbers = #tpu.dot_dimension_numbers<[1], [0], [0], [1], [0, 0, 1, 1], [], []>} : vector<26x128xbf16>, vector<128x128xbf16>, vector<26x128xf32> -> vector<26x128xf32>
    %21 = vector.extract_strided_slice %12 {offsets = [1, 0], sizes = [26, 128], strides = [1, 1]} : vector<32x128xbf16> to vector<26x128xbf16>
    %c1_14 = arith.constant 1 : index
    %c0_15 = arith.constant 0 : index
    %c0_16 = arith.constant 0 : index
    %22 = vector.load %arg2[%c1_14, %c0_15, %c0_16] : memref<7x128x128xbf16, #tpu.memory_space<vmem>>, vector<1x128x128xbf16>
    %23 = vector.shape_cast %22 : vector<1x128x128xbf16> to vector<128x128xbf16>
    %cst_17 = arith.constant dense<0.000000e+00> : vector<26x128xf32>
    %24 = tpu.matmul %21, %23, %cst_17 {dimension_numbers = #tpu.dot_dimension_numbers<[1], [0], [0], [1], [0, 0, 1, 1], [], []>} : vector<26x128xbf16>, vector<128x128xbf16>, vector<26x128xf32> -> vector<26x128xf32>
    %25 = arith.addf %20, %24 : vector<26x128xf32>
    %26 = vector.extract_strided_slice %12 {offsets = [2, 0], sizes = [26, 128], strides = [1, 1]} : vector<32x128xbf16> to vector<26x128xbf16>
    %c2_18 = arith.constant 2 : index
    %c0_19 = arith.constant 0 : index
    %c0_20 = arith.constant 0 : index
    %27 = vector.load %arg2[%c2_18, %c0_19, %c0_20] : memref<7x128x128xbf16, #tpu.memory_space<vmem>>, vector<1x128x128xbf16>
    %28 = vector.shape_cast %27 : vector<1x128x128xbf16> to vector<128x128xbf16>
    %cst_21 = arith.constant dense<0.000000e+00> : vector<26x128xf32>
    %29 = tpu.matmul %26, %28, %cst_21 {dimension_numbers = #tpu.dot_dimension_numbers<[1], [0], [0], [1], [0, 0, 1, 1], [], []>} : vector<26x128xbf16>, vector<128x128xbf16>, vector<26x128xf32> -> vector<26x128xf32>
    %30 = arith.addf %25, %29 : vector<26x128xf32>
    %31 = vector.extract_strided_slice %12 {offsets = [3, 0], sizes = [26, 128], strides = [1, 1]} : vector<32x128xbf16> to vector<26x128xbf16>
    %c3 = arith.constant 3 : index
    %c0_22 = arith.constant 0 : index
    %c0_23 = arith.constant 0 : index
    %32 = vector.load %arg2[%c3, %c0_22, %c0_23] : memref<7x128x128xbf16, #tpu.memory_space<vmem>>, vector<1x128x128xbf16>
    %33 = vector.shape_cast %32 : vector<1x128x128xbf16> to vector<128x128xbf16>
    %cst_24 = arith.constant dense<0.000000e+00> : vector<26x128xf32>
    %34 = tpu.matmul %31, %33, %cst_24 {dimension_numbers = #tpu.dot_dimension_numbers<[1], [0], [0], [1], [0, 0, 1, 1], [], []>} : vector<26x128xbf16>, vector<128x128xbf16>, vector<26x128xf32> -> vector<26x128xf32>
    %35 = arith.addf %30, %34 : vector<26x128xf32>
    %36 = vector.extract_strided_slice %12 {offsets = [4, 0], sizes = [26, 128], strides = [1, 1]} : vector<32x128xbf16> to vector<26x128xbf16>
    %c4_25 = arith.constant 4 : index
    %c0_26 = arith.constant 0 : index
    %c0_27 = arith.constant 0 : index
    %37 = vector.load %arg2[%c4_25, %c0_26, %c0_27] : memref<7x128x128xbf16, #tpu.memory_space<vmem>>, vector<1x128x128xbf16>
    %38 = vector.shape_cast %37 : vector<1x128x128xbf16> to vector<128x128xbf16>
    %cst_28 = arith.constant dense<0.000000e+00> : vector<26x128xf32>
    %39 = tpu.matmul %36, %38, %cst_28 {dimension_numbers = #tpu.dot_dimension_numbers<[1], [0], [0], [1], [0, 0, 1, 1], [], []>} : vector<26x128xbf16>, vector<128x128xbf16>, vector<26x128xf32> -> vector<26x128xf32>
    %40 = arith.addf %35, %39 : vector<26x128xf32>
    %41 = vector.extract_strided_slice %12 {offsets = [5, 0], sizes = [26, 128], strides = [1, 1]} : vector<32x128xbf16> to vector<26x128xbf16>
    %c5 = arith.constant 5 : index
    %c0_29 = arith.constant 0 : index
    %c0_30 = arith.constant 0 : index
    %42 = vector.load %arg2[%c5, %c0_29, %c0_30] : memref<7x128x128xbf16, #tpu.memory_space<vmem>>, vector<1x128x128xbf16>
    %43 = vector.shape_cast %42 : vector<1x128x128xbf16> to vector<128x128xbf16>
    %cst_31 = arith.constant dense<0.000000e+00> : vector<26x128xf32>
    %44 = tpu.matmul %41, %43, %cst_31 {dimension_numbers = #tpu.dot_dimension_numbers<[1], [0], [0], [1], [0, 0, 1, 1], [], []>} : vector<26x128xbf16>, vector<128x128xbf16>, vector<26x128xf32> -> vector<26x128xf32>
    %45 = arith.addf %40, %44 : vector<26x128xf32>
    %46 = vector.extract_strided_slice %12 {offsets = [6, 0], sizes = [26, 128], strides = [1, 1]} : vector<32x128xbf16> to vector<26x128xbf16>
    %c6 = arith.constant 6 : index
    %c0_32 = arith.constant 0 : index
    %c0_33 = arith.constant 0 : index
    %47 = vector.load %arg2[%c6, %c0_32, %c0_33] : memref<7x128x128xbf16, #tpu.memory_space<vmem>>, vector<1x128x128xbf16>
    %48 = vector.shape_cast %47 : vector<1x128x128xbf16> to vector<128x128xbf16>
    %cst_34 = arith.constant dense<0.000000e+00> : vector<26x128xf32>
    %49 = tpu.matmul %46, %48, %cst_34 {dimension_numbers = #tpu.dot_dimension_numbers<[1], [0], [0], [1], [0, 0, 1, 1], [], []>} : vector<26x128xbf16>, vector<128x128xbf16>, vector<26x128xf32> -> vector<26x128xf32>
    %50 = arith.addf %45, %49 : vector<26x128xf32>
    %51 = vector.broadcast %13 : vector<1x128xf32> to vector<26x128xf32>
    %52 = arith.addf %50, %51 : vector<26x128xf32>
    %cst_35 = arith.constant 0.000000e+00 : f32
    %53 = vector.broadcast %cst_35 : f32 to vector<26x128xf32>
    %54 = arith.maximumf %52, %53 : vector<26x128xf32>
    %c5_i32 = arith.constant 5 : i32
    %55 = arith.subi %10, %c5_i32 : i32
    %56 = tpu.iota {dimensions = array<i32: 0>} : vector<26x1xi32>
    %57 = vector.broadcast %55 : i32 to vector<26x1xi32>
    %58 = arith.addi %56, %57 : vector<26x1xi32>
    %c0_i32_36 = arith.constant 0 : i32
    %59 = vector.broadcast %c0_i32_36 : i32 to vector<26x1xi32>
    %60 = arith.cmpi sge, %58, %59 : vector<26x1xi32>
    %c16_i32_37 = arith.constant 16 : i32
    %61 = vector.broadcast %c16_i32_37 : i32 to vector<26x1xi32>
    %62 = arith.cmpi slt, %58, %61 : vector<26x1xi32>
    %63 = arith.andi %60, %62 : vector<26x1xi1>
    %cst_38 = arith.constant 0.000000e+00 : f32
    %64 = vector.shape_cast %63 : vector<26x1xi1> to vector<26x1xi1>
    %65 = vector.broadcast %64 : vector<26x1xi1> to vector<26x128xi1>
    %66 = vector.broadcast %cst_38 : f32 to vector<26x128xf32>
    %67 = arith.select %65, %54, %66 : vector<26x128xi1>, vector<26x128xf32>
    %68 = arith.truncf %67 : vector<26x128xf32> to vector<26x128xbf16>
    %69 = vector.extract_strided_slice %68 {offsets = [0, 0], sizes = [22, 128], strides = [1, 1]} : vector<26x128xbf16> to vector<22x128xbf16>
    %c0_39 = arith.constant 0 : index
    %c0_40 = arith.constant 0 : index
    %c0_41 = arith.constant 0 : index
    %70 = vector.load %arg3[%c0_39, %c0_40, %c0_41] : memref<5x128x128xbf16, #tpu.memory_space<vmem>>, vector<1x128x128xbf16>
    %71 = vector.shape_cast %70 : vector<1x128x128xbf16> to vector<128x128xbf16>
    %cst_42 = arith.constant dense<0.000000e+00> : vector<22x128xf32>
    %72 = tpu.matmul %69, %71, %cst_42 {dimension_numbers = #tpu.dot_dimension_numbers<[1], [0], [0], [1], [0, 0, 1, 1], [], []>} : vector<22x128xbf16>, vector<128x128xbf16>, vector<22x128xf32> -> vector<22x128xf32>
    %73 = vector.extract_strided_slice %68 {offsets = [1, 0], sizes = [22, 128], strides = [1, 1]} : vector<26x128xbf16> to vector<22x128xbf16>
    %c1_43 = arith.constant 1 : index
    %c0_44 = arith.constant 0 : index
    %c0_45 = arith.constant 0 : index
    %74 = vector.load %arg3[%c1_43, %c0_44, %c0_45] : memref<5x128x128xbf16, #tpu.memory_space<vmem>>, vector<1x128x128xbf16>
    %75 = vector.shape_cast %74 : vector<1x128x128xbf16> to vector<128x128xbf16>
    %cst_46 = arith.constant dense<0.000000e+00> : vector<22x128xf32>
    %76 = tpu.matmul %73, %75, %cst_46 {dimension_numbers = #tpu.dot_dimension_numbers<[1], [0], [0], [1], [0, 0, 1, 1], [], []>} : vector<22x128xbf16>, vector<128x128xbf16>, vector<22x128xf32> -> vector<22x128xf32>
    %77 = arith.addf %72, %76 : vector<22x128xf32>
    %78 = vector.extract_strided_slice %68 {offsets = [2, 0], sizes = [22, 128], strides = [1, 1]} : vector<26x128xbf16> to vector<22x128xbf16>
    %c2_47 = arith.constant 2 : index
    %c0_48 = arith.constant 0 : index
    %c0_49 = arith.constant 0 : index
    %79 = vector.load %arg3[%c2_47, %c0_48, %c0_49] : memref<5x128x128xbf16, #tpu.memory_space<vmem>>, vector<1x128x128xbf16>
    %80 = vector.shape_cast %79 : vector<1x128x128xbf16> to vector<128x128xbf16>
    %cst_50 = arith.constant dense<0.000000e+00> : vector<22x128xf32>
    %81 = tpu.matmul %78, %80, %cst_50 {dimension_numbers = #tpu.dot_dimension_numbers<[1], [0], [0], [1], [0, 0, 1, 1], [], []>} : vector<22x128xbf16>, vector<128x128xbf16>, vector<22x128xf32> -> vector<22x128xf32>
    %82 = arith.addf %77, %81 : vector<22x128xf32>
    %83 = vector.extract_strided_slice %68 {offsets = [3, 0], sizes = [22, 128], strides = [1, 1]} : vector<26x128xbf16> to vector<22x128xbf16>
    %c3_51 = arith.constant 3 : index
    %c0_52 = arith.constant 0 : index
    %c0_53 = arith.constant 0 : index
    %84 = vector.load %arg3[%c3_51, %c0_52, %c0_53] : memref<5x128x128xbf16, #tpu.memory_space<vmem>>, vector<1x128x128xbf16>
    %85 = vector.shape_cast %84 : vector<1x128x128xbf16> to vector<128x128xbf16>
    %cst_54 = arith.constant dense<0.000000e+00> : vector<22x128xf32>
    %86 = tpu.matmul %83, %85, %cst_54 {dimension_numbers = #tpu.dot_dimension_numbers<[1], [0], [0], [1], [0, 0, 1, 1], [], []>} : vector<22x128xbf16>, vector<128x128xbf16>, vector<22x128xf32> -> vector<22x128xf32>
    %87 = arith.addf %82, %86 : vector<22x128xf32>
    %88 = vector.extract_strided_slice %68 {offsets = [4, 0], sizes = [22, 128], strides = [1, 1]} : vector<26x128xbf16> to vector<22x128xbf16>
    %c4_55 = arith.constant 4 : index
    %c0_56 = arith.constant 0 : index
    %c0_57 = arith.constant 0 : index
    %89 = vector.load %arg3[%c4_55, %c0_56, %c0_57] : memref<5x128x128xbf16, #tpu.memory_space<vmem>>, vector<1x128x128xbf16>
    %90 = vector.shape_cast %89 : vector<1x128x128xbf16> to vector<128x128xbf16>
    %cst_58 = arith.constant dense<0.000000e+00> : vector<22x128xf32>
    %91 = tpu.matmul %88, %90, %cst_58 {dimension_numbers = #tpu.dot_dimension_numbers<[1], [0], [0], [1], [0, 0, 1, 1], [], []>} : vector<22x128xbf16>, vector<128x128xbf16>, vector<22x128xf32> -> vector<22x128xf32>
    %92 = arith.addf %87, %91 : vector<22x128xf32>
    %93 = vector.broadcast %14 : vector<1x128xf32> to vector<22x128xf32>
    %94 = arith.addf %92, %93 : vector<22x128xf32>
    %cst_59 = arith.constant 0.000000e+00 : f32
    %95 = vector.broadcast %cst_59 : f32 to vector<22x128xf32>
    %96 = arith.maximumf %94, %95 : vector<22x128xf32>
    %c3_i32 = arith.constant 3 : i32
    %97 = arith.subi %10, %c3_i32 : i32
    %98 = tpu.iota {dimensions = array<i32: 0>} : vector<22x1xi32>
    %99 = vector.broadcast %97 : i32 to vector<22x1xi32>
    %100 = arith.addi %98, %99 : vector<22x1xi32>
    %c0_i32_60 = arith.constant 0 : i32
    %101 = vector.broadcast %c0_i32_60 : i32 to vector<22x1xi32>
    %102 = arith.cmpi sge, %100, %101 : vector<22x1xi32>
    %c16_i32_61 = arith.constant 16 : i32
    %103 = vector.broadcast %c16_i32_61 : i32 to vector<22x1xi32>
    %104 = arith.cmpi slt, %100, %103 : vector<22x1xi32>
    %105 = arith.andi %102, %104 : vector<22x1xi1>
    %cst_62 = arith.constant 0.000000e+00 : f32
    %106 = vector.shape_cast %105 : vector<22x1xi1> to vector<22x1xi1>
    %107 = vector.broadcast %106 : vector<22x1xi1> to vector<22x128xi1>
    %108 = vector.broadcast %cst_62 : f32 to vector<22x128xf32>
    %109 = arith.select %107, %96, %108 : vector<22x128xi1>, vector<22x128xf32>
    %110 = arith.truncf %109 : vector<22x128xf32> to vector<22x128xbf16>
    %111 = vector.extract_strided_slice %110 {offsets = [2, 0], sizes = [16, 128], strides = [1, 1]} : vector<22x128xbf16> to vector<16x128xbf16>
    %c0_63 = arith.constant 0 : index
    %c0_64 = arith.constant 0 : index
    %c0_65 = arith.constant 0 : index
    %112 = vector.load %arg4[%c0_63, %c0_64, %c0_65] : memref<3x128x128xbf16, #tpu.memory_space<vmem>>, vector<1x128x128xbf16>
    %113 = vector.shape_cast %112 : vector<1x128x128xbf16> to vector<128x128xbf16>
    %cst_66 = arith.constant dense<0.000000e+00> : vector<16x128xf32>
    %114 = tpu.matmul %111, %113, %cst_66 {dimension_numbers = #tpu.dot_dimension_numbers<[1], [0], [0], [1], [0, 0, 1, 1], [], []>} : vector<16x128xbf16>, vector<128x128xbf16>, vector<16x128xf32> -> vector<16x128xf32>
    %115 = vector.extract_strided_slice %110 {offsets = [3, 0], sizes = [16, 128], strides = [1, 1]} : vector<22x128xbf16> to vector<16x128xbf16>
    %c1_67 = arith.constant 1 : index
    %c0_68 = arith.constant 0 : index
    %c0_69 = arith.constant 0 : index
    %116 = vector.load %arg4[%c1_67, %c0_68, %c0_69] : memref<3x128x128xbf16, #tpu.memory_space<vmem>>, vector<1x128x128xbf16>
    %117 = vector.shape_cast %116 : vector<1x128x128xbf16> to vector<128x128xbf16>
    %cst_70 = arith.constant dense<0.000000e+00> : vector<16x128xf32>
    %118 = tpu.matmul %115, %117, %cst_70 {dimension_numbers = #tpu.dot_dimension_numbers<[1], [0], [0], [1], [0, 0, 1, 1], [], []>} : vector<16x128xbf16>, vector<128x128xbf16>, vector<16x128xf32> -> vector<16x128xf32>
    %119 = arith.addf %114, %118 : vector<16x128xf32>
    %120 = vector.extract_strided_slice %110 {offsets = [4, 0], sizes = [16, 128], strides = [1, 1]} : vector<22x128xbf16> to vector<16x128xbf16>
    %c2_71 = arith.constant 2 : index
    %c0_72 = arith.constant 0 : index
    %c0_73 = arith.constant 0 : index
    %121 = vector.load %arg4[%c2_71, %c0_72, %c0_73] : memref<3x128x128xbf16, #tpu.memory_space<vmem>>, vector<1x128x128xbf16>
    %122 = vector.shape_cast %121 : vector<1x128x128xbf16> to vector<128x128xbf16>
    %cst_74 = arith.constant dense<0.000000e+00> : vector<16x128xf32>
    %123 = tpu.matmul %120, %122, %cst_74 {dimension_numbers = #tpu.dot_dimension_numbers<[1], [0], [0], [1], [0, 0, 1, 1], [], []>} : vector<16x128xbf16>, vector<128x128xbf16>, vector<16x128xf32> -> vector<16x128xf32>
    %124 = arith.addf %119, %123 : vector<16x128xf32>
    %125 = vector.broadcast %15 : vector<1x128xf32> to vector<16x128xf32>
    %126 = arith.addf %124, %125 : vector<16x128xf32>
    %127 = vector.extract_strided_slice %12 {offsets = [8, 0], sizes = [16, 128], strides = [1, 1]} : vector<32x128xbf16> to vector<16x128xbf16>
    %c0_75 = arith.constant 0 : index
    %c0_76 = arith.constant 0 : index
    %128 = vector.load %arg5[%c0_75, %c0_76] : memref<128x128xbf16, #tpu.memory_space<vmem>>, vector<128x128xbf16>
    %cst_77 = arith.constant dense<0.000000e+00> : vector<16x128xf32>
    %129 = tpu.matmul %127, %128, %cst_77 {dimension_numbers = #tpu.dot_dimension_numbers<[1], [0], [0], [1], [0, 0, 1, 1], [], []>} : vector<16x128xbf16>, vector<128x128xbf16>, vector<16x128xf32> -> vector<16x128xf32>
    %130 = vector.broadcast %16 : vector<1x128xf32> to vector<16x128xf32>
    %131 = arith.addf %129, %130 : vector<16x128xf32>
    %132 = arith.addf %126, %131 : vector<16x128xf32>
    %cst_78 = arith.constant 0.000000e+00 : f32
    %133 = vector.broadcast %cst_78 : f32 to vector<16x128xf32>
    %134 = arith.maximumf %132, %133 : vector<16x128xf32>
    %135 = arith.truncf %134 : vector<16x128xf32> to vector<16x128xbf16>
    %c0_79 = arith.constant 0 : index
    %c0_80 = arith.constant 0 : index
    %c0_81 = arith.constant 0 : index
    %136 = vector.load %arg7[%c0_79, %c0_80, %c0_81] : memref<1x16x128xbf16, #tpu.memory_space<vmem>>, vector<1x16x128xbf16>
    %137 = vector.shape_cast %136 : vector<1x16x128xbf16> to vector<16x128xbf16>
    %138 = vector.shape_cast %135 : vector<16x128xbf16> to vector<1x16x128xbf16>
    tpu.vector_store %arg7[%c0_79, %c0_80, %c0_81], %138 {strides = array<i32>} : memref<1x16x128xbf16, #tpu.memory_space<vmem>>, vector<1x16x128xbf16>,
    return
  }
  func.func @transform_0(%arg0: i32) -> (i32, i32, i32) {
    %c0_i32 = arith.constant 0 : i32
    %c0_i32_0 = arith.constant 0 : i32
    %c0_i32_1 = arith.constant 0 : i32
    return %arg0, %c0_i32, %c0_i32_0 : i32, i32, i32
  }
  func.func @transform_1(%arg0: i32) -> (i32, i32, i32) {
    %c0_i32 = arith.constant 0 : i32
    %c0_i32_0 = arith.constant 0 : i32
    %c0_i32_1 = arith.constant 0 : i32
    %c0_i32_2 = arith.constant 0 : i32
    return %c0_i32, %c0_i32_0, %c0_i32_1 : i32, i32, i32
  }
  func.func @transform_2(%arg0: i32) -> (i32, i32, i32) {
    %c0_i32 = arith.constant 0 : i32
    %c0_i32_0 = arith.constant 0 : i32
    %c0_i32_1 = arith.constant 0 : i32
    %c0_i32_2 = arith.constant 0 : i32
    return %c0_i32, %c0_i32_0, %c0_i32_1 : i32, i32, i32
  }
  func.func @transform_3(%arg0: i32) -> (i32, i32, i32) {
    %c0_i32 = arith.constant 0 : i32
    %c0_i32_0 = arith.constant 0 : i32
    %c0_i32_1 = arith.constant 0 : i32
    %c0_i32_2 = arith.constant 0 : i32
    return %c0_i32, %c0_i32_0, %c0_i32_1 : i32, i32, i32
  }
  func.func @transform_4(%arg0: i32) -> (i32, i32) {
    %c0_i32 = arith.constant 0 : i32
    %c0_i32_0 = arith.constant 0 : i32
    %c0_i32_1 = arith.constant 0 : i32
    return %c0_i32, %c0_i32_0 : i32, i32
  }
  func.func @transform_5(%arg0: i32) -> (i32, i32) {
    %c0_i32 = arith.constant 0 : i32
    %c0_i32_0 = arith.constant 0 : i32
    %c0_i32_1 = arith.constant 0 : i32
    return %c0_i32, %c0_i32_0 : i32, i32
  }
  func.func @transform_6(%arg0: i32) -> (i32, i32, i32) {
    %c0_i32 = arith.constant 0 : i32
    %c0_i32_0 = arith.constant 0 : i32
    %c0_i32_1 = arith.constant 0 : i32
    return %arg0, %c0_i32, %c0_i32_0 : i32, i32, i32
  }
}

</mosaic_0001>

<bundles_post_ra>
// kernel: resnet_block_forward.1
= control target key start
LH: loop header
LB: loop body
LE: loop exit
PB: predicated region body
PF: predicated region fallthrough
CT: control target
= control target key end

     0   :  { %11 = vsyncpa [#allocation3], 0  ;;  %s3727_s0 = inlined_call_operand.vmem [shape: bf16[2,32,128], index: 0, kind: input, shape index: {}]   ;;  %s3728_s1 = inlined_call_operand.hbm [shape: bf16[7,128,128], index: 1, kind: input, shape index: {}]   ;;  %s3729_s2 = inlined_call_operand.hbm [shape: bf16[5,128,128], index: 2, kind: input, shape index: {}]   ;;  %s3730_s3 = inlined_call_operand.hbm [shape: bf16[3,128,128], index: 3, kind: input, shape index: {}]   ;;  %s3731_s4 = inlined_call_operand.vmem [shape: bf16[128,128], index: 4, kind: input, shape index: {}]   ;;  %s3732_s5 = inlined_call_operand.vmem [shape: f32[8,128], index: 5, kind: input, shape index: {}]   ;;  %s3733_s6 = inlined_call_operand.vmem [shape: bf16[2,16,128], index: 6, kind: output, shape index: {}]  }
   0x1   :  { %12 = vsyncpa [#allocation5], 0  ;;  %s3426_s21 = smov 0  }
   0x2 LB: > { %s3432_s22 = sadd.s32 4294967295, %s3381_s21   ;;  %p2447_p0 = scmp.ge.s32.totalorder %s3381_s21, 1  ;;  %s3381_s21 = sphi %s3426_s21, %s18_s21  }
   0x3   : > { %p180_p1 = scmp.lt.s32.totalorder %s3381_s21, 3  ;;  %p3734_p2 = scmp.eq.s32.totalorder %s3432_s22, 0 }
   0x4   : > { %s3383_s24 = smov [#allocation4]   ;;  %s3384_s26 = smov [#allocation2]  }
   0x5   : > { %p3437_p3 = pnand %p2447_p0, %p180_p1  ;;  %s205_s25 = sshll.u32 %s3383_s24, 4  ;;  %s206_s25 = int_to_ptr.vmem [resolvable:$true] %s205_s25 }
   0x6   : > { %s192_s27 = sshll.u32 %s3384_s26, 4  ;;  %s3385_s29 = smov [#allocation6]   ;;  %s3449_s27 = int_to_ptr.vmem [resolvable:$true] %s192_s27 }
   0x7   : > { %s3736_s23 = scalar_select %p3437_p3, 1, 0 }
   0x8   : > { %p3118_p4 = pneg %p3437_p3  ;;  %s218_s30 = sshll.u32 %s3385_s29, 4  ;;  %s3451_s30 = int_to_ptr.vmem [resolvable:$true] %s218_s30 }
   0x9   : > { %s3283_s9 = scalar_lea.hbm %s3729_s2, 5120 }
   0xa   : > { %p3445_p5 = pnand %p3734_p2, %p3118_p4  ;;  %p3284_p6 = scmp.ne.s32.totalorder %s3729_s2, %s3283_s9 }
   0xb   : > { %p3290_p10 = scmp.lt.u32.totalorder %s3283_s9, %s3729_s2 }
   0xc   : > { %p3461_p7 = pneg %p3445_p5 }
   0xe   : > { %p3286_p8 = pnand %p3461_p7, %p3284_p6 }
  0x10   : > { %p3287_p9 = pneg %p3286_p8 }
  0x12   : > { %p3292_p11 = pnand %p3290_p10, %p3287_p9 }
  0x14   : > { %3295 = shalt.err (!%p3292_p11)
}
  0x15   : > { %s3296_s15 = scalar_lea.vmem %s206_s25, 5120  ;;  %p3304_p1 = scmp.lt.s32.totalorder %s206_s25, %s206_s25 }
  0x16   : > { %p3297_p12 = scmp.ne.s32.totalorder %s206_s25, %s3296_s15  ;;  %p3305_p4 = scmp.lt.s32.totalorder %s3296_s15, %s3296_s15 }
  0x18   : > { %p3299_p13 = pnand %p3297_p12, %p3461_p7  ;;  %p3306_p2 = por %p3305_p4, %p3304_p1 }
  0x1a   : > { %p3300_p0 = pneg %p3299_p13 }
  0x1c   : > { %p3307_p3 = pnand %p3306_p2, %p3300_p0 }
  0x1e   : > { %3310 = shalt.err (!%p3307_p3)
}
  0x1f   : > { %s3386_s16 = smov 64   ;;  %s3387_s17 = smov 4  }
  0x20   : > { %3124 = dma.hbm_to_vmem [thread:$0]  (!%p3445_p5), %s3729_s2, 5120, %s206_s25, [#allocation5], %s3386_s16, %s3386_s16, %s3387_s17  }
  0x21   : > { %s3311_s26 = scalar_lea.hbm %s3728_s1, 7168 }
  0x22   : > { %p3312_p2 = scmp.ne.s32.totalorder %s3728_s1, %s3311_s26  ;;  %p3318_p8 = scmp.lt.u32.totalorder %s3311_s26, %s3728_s1 }
  0x24   : > { %p3314_p3 = pnand %p3312_p2, %p3461_p7 }
  0x26   : > { %p3315_p6 = pneg %p3314_p3 }
  0x28   : > { %p3320_p9 = pnand %p3318_p8, %p3315_p6 }
  0x2a   : > { %3323 = shalt.err (!%p3320_p9)
}
  0x2b   : > { %s3324_s25 = scalar_lea.vmem %s3449_s27, 7168  ;;  %p3332_p13 = scmp.lt.s32.totalorder %s3449_s27, %s3449_s27 }
  0x2c   : > { %p3325_p10 = scmp.ne.s32.totalorder %s3449_s27, %s3324_s25  ;;  %p3333_p0 = scmp.lt.s32.totalorder %s3324_s25, %s3324_s25 }
  0x2e   : > { %p3327_p11 = pnand %p3325_p10, %p3461_p7  ;;  %p3334_p1 = por %p3333_p0, %p3332_p13 }
  0x30   : > { %p3328_p12 = pneg %p3327_p11 }
  0x32   : > { %p3335_p4 = pnand %p3334_p1, %p3328_p12 }
  0x34   : > { %3338 = shalt.err (!%p3335_p4)
}
  0x35   : > { %3121 = dma.hbm_to_vmem [thread:$0]  (!%p3445_p5), %s3728_s1, 7168, %s3449_s27, [#allocation3], %s3386_s16, %s3386_s16, %s3387_s17  }
  0x36   : > { %s3339_s15 = scalar_lea.hbm %s3730_s3, 3072 }
  0x37   : > { %p3340_p2 = scmp.ne.s32.totalorder %s3730_s3, %s3339_s15  ;;  %p3346_p8 = scmp.lt.u32.totalorder %s3339_s15, %s3730_s3 }
  0x39   : > { %p3342_p3 = pnand %p3340_p2, %p3461_p7 }
  0x3b   : > { %p3343_p6 = pneg %p3342_p3 }
  0x3d   : > { %p3348_p9 = pnand %p3346_p8, %p3343_p6 }
  0x3f   : > { %3351 = shalt.err (!%p3348_p9)
}
  0x40   : > { %s3352_s27 = scalar_lea.vmem %s3451_s30, 3072  ;;  %p3360_p13 = scmp.lt.s32.totalorder %s3451_s30, %s3451_s30 }
  0x41   : > { %p3353_p10 = scmp.ne.s32.totalorder %s3451_s30, %s3352_s27  ;;  %p3361_p0 = scmp.lt.s32.totalorder %s3352_s27, %s3352_s27 }
  0x43   : > { %p3355_p11 = pnand %p3353_p10, %p3461_p7  ;;  %p3362_p1 = por %p3361_p0, %p3360_p13 }
  0x45   : > { %p3356_p12 = pneg %p3355_p11 }
  0x47   : > { %p3363_p4 = pnand %p3362_p1, %p3356_p12 }
  0x49   : > { %3366 = shalt.err (!%p3363_p4)
}
  0x4a   : > { %3127 = dma.hbm_to_vmem [thread:$0]  (!%p3445_p5), %s3730_s3, 3072, %s3451_s30, [#allocation5], %s3386_s16, %s3386_s16, %s3387_s17  }
  0x4b   : > { %p3739_p2 = scmp.ne.s32.totalorder %s3736_s23, 0 }
  0x4c   : > { %p3740_p7 = scmp.eq.s32.totalorder (!%p3739_p2), %s3432_s22, 0 }
  0x4d   : > { %248 = sbr.rel (%p3739_p2) target bundleno = 1094 (0x446), region = 44 }
  0x54   : > { %3372 = dma.done.wait (%p3740_p7), [#allocation3], 7168   ;;  %p3741_p3 = pmov %p3740_p7 }
  0x56   : > { %3374 = vsyncadd (%p3741_p3), [#allocation3], 4294960128  ;;  %p3742_p6 = pmov %p3741_p3 }
  0x57   : > { %p3743_p8 = pmov %p3741_p3 }
  0x58   : > { %3376 = dma.done.wait (%p3742_p6), [#allocation5], 8192  }
  0x59   : > { %3378 = vsyncadd (%p3743_p8), [#allocation5], 4294959104  ;;  %p286_p9 = scmp.lt.s32.totalorder %s3432_s22, 1  ;;  %v3150_v0 = vld [vmem:[#allocation2 + $0x40] sm:$0xff]   ;;  %v3151_v1 = vld [vmem:[#allocation2 + $0x48] sm:$0xff]   ;;  %vm831_vm2 = vcmask 1045504  }
  0x5a   : > { %2770 = vmatprep.subr.bf16.mxu1 %v3150_v0  ;;  %v3152_v2 = vld [vmem:[#allocation2 + $0x50] sm:$0xff]   ;;  %v3153_v3 = vld [vmem:[#allocation2 + $0x58] sm:$0xff]   ;;  %vm348_vm0 = vsmask.f32 7424  ;;  %v3154_v12 = vld [vmem:[#allocation2 + $0x60] sm:$0xff]   ;;  %vm579_vm3 = vcmask 1046528  }
  0x5b   : > { %s3745_s22 = smov (!%p286_p9, %s3432_s22), 1  ;;  %2771 = vmatpush3.bf16.msra.mxu1 %v3150_v0  ;;  %vm703_vm1 = vsmask.f32 6400  ;;  %v3155_v17 = vld [vmem:[#allocation2 + $0x68] sm:$0xff]   ;;  %v3156_v23 = vld [vmem:[#allocation2 + $0x70] sm:$0xff]   ;;  %v3157_v29 = vld [vmem:[#allocation2 + $0x78] sm:$0xff]  }
  0x5c   : > { %s2605_s23 = sshll.u32 %s3745_s22, 4  ;;  %2772 = vmatprep.subr.bf16.mxu1 %v3151_v1  ;;  %v3176_v32 = vld [vmem:[#allocation2 + $0x100] sm:$0xff]   ;;  %v3178_v34 = vld [vmem:[#allocation2 + $0x108] sm:$0xff]   ;;  %v3180_v36 = vld [vmem:[#allocation2 + $0x110] sm:$0xff]   ;;  %vm1083_vm4 = vcmask 1044480   ;;  %vm3389_vm8 = vmmov 1  }
  0x5d   : > { %s3550_s12 = scalar_lea.vmem %s3727_s0, %s2605_s23  ;;  %v3160_v33 = vld [vmem:[#allocation2] sm:$0xff]   ;;  %2850 = vmatprep.subr.bf16.mxu0 %v3176_v32  ;;  %v3161_v38 = vld [vmem:[#allocation2 + $0x8] sm:$0xff]   ;;  %v3182_v41 = vld [vmem:[#allocation2 + $0x118] sm:$0xff]   ;;  %vm955_vm5 = vsmask.f32 5376  ;;  %vm3390_vm11 = vmmov 0  }
  0x5e   : > { %v297_v4 = vld [vmem:[%s3550_s12] sm:$0xf]  ;;  %v298_v5 = vld [vmem:[%s3550_s12 + $0x4] sm:$0xf]  ;;  %v299_v6 = vld [vmem:[%s3550_s12 + $0x8] sm:$0xf]  ;;  %2851 = vmatpush3.bf16.msra.mxu0 %v3176_v32 }
  0x5f   : > { %2773 = vmatpush3.bf16.msra.mxu1 %v3151_v1  ;;  %v300_v7 = vld [vmem:[%s3550_s12 + $0xc] sm:$0xf]  ;;  %v3556_v8 = vcombine.low %v297_v4, %v298_v5  ;;  %2852 = vmatprep.subr.bf16.mxu0 %v3178_v34  ;;  %v3162_v44 = vld [vmem:[#allocation2 + $0x10] sm:$0xff]   ;;  %v3184_v46 = vld [vmem:[#allocation2 + $0x120] sm:$0xff]   ;;  %s2606_s8 = sshll.u32 %s3745_s22, 3 }
  0x60   : > { %2774 = vmatprep.subr.bf16.mxu1 %v3152_v2  ;;  %v3558_v9 = vcombine.low %v299_v6, %v300_v7  ;;  %v3163_v47 = vld [vmem:[#allocation2 + $0x18] sm:$0xff]   ;;  %v3186_v48 = vld [vmem:[#allocation2 + $0x128] sm:$0xff]   ;;  %v3164_v49 = vld [vmem:[#allocation2 + $0x20] sm:$0xff]   ;;  %s295_s25 = scalar_lea.vmem %s3733_s6, %s2606_s8 }
  0x61   : > { %v350_v10 = vshrl.u32 %v3556_v8, 16  ;;  %v352_v11 = vshll.u32 %v3556_v8, 16  ;;  %v832_v26 = vrot.slane %v3556_v8, 2  ;;  %v3188_v50 = vld [vmem:[#allocation2 + $0x130] sm:$0xff]   ;;  %v3165_v51 = vld [vmem:[#allocation2 + $0x28] sm:$0xff]   ;;  %v3190_v52 = vld [vmem:[#allocation2 + $0x138] sm:$0xff]  }
  0x62   : > { %v357_v13 = vshll.u32 %v3558_v9, 16  ;;  %v361_v19 = vshrl.u32 %v3558_v9, 16  ;;  %v833_v28 = vrot.slane %v3558_v9, 2  ;;  %2853 = vmatpush3.bf16.msra.mxu0 %v3178_v34  ;;  %v3166_v53 = vld [vmem:[#allocation2 + $0x30] sm:$0xff]   ;;  %v1084_v54 = vrot.slane %v3556_v8, 3  ;;  %v3192_v55 = vld [vmem:[#allocation2 + $0x180] sm:$0xff]  }
  0x63   : > { %2775 = vmatpush3.bf16.msra.mxu1 %v3152_v2  ;;  %v354_v14 = vrot.slane %v352_v11, 1  ;;  %v704_v20 = vrot.slane %v350_v10, 1  ;;  %v705_v21 = vrot.slane %v352_v11, 2  ;;  %v956_v37 = vrot.slane %v350_v10, 2  ;;  %2854 = vmatprep.subr.bf16.mxu0 %v3180_v36  ;;  %v3167_v57 = vld [vmem:[#allocation2 + $0x38] sm:$0xff]   ;;  %v3194_v60 = vld [vmem:[#allocation2 + $0x188] sm:$0xff]  }
  0x64   : > { %2776 = vmatprep.subr.bf16.mxu1 %v3153_v3  ;;  %v359_v15 = vrot.slane %v357_v13, 1  ;;  %v707_v22 = vrot.slane %v361_v19, 1  ;;  %v708_v25 = vrot.slane %v357_v13, 2  ;;  %v834_v31 = vsel %vm831_vm2, %v832_v26, %v833_v28  ;;  %v3168_v61 = vld [vmem:[#allocation2 + $0x80] sm:$0xff]   ;;  %v3196_v0 = vld [vmem:[#allocation2 + $0x190] sm:$0xff]   ;;  %v3169_v1 = vld [vmem:[#allocation2 + $0x88] sm:$0xff]  }
  0x65   : > { %v355_v16 = vor.u32 %v354_v14, %v350_v10  ;;  %v706_v24 = vor.u32 %v705_v21, %v704_v20  ;;  %2866 = vmatprep.mubr.bf16.mxu0 %v834_v31  ;;  %v957_v39 = vrot.slane %v352_v11, 3  ;;  %v959_v40 = vrot.slane %v361_v19, 2  ;;  %v3170_v4 = vld [vmem:[#allocation2 + $0x90] sm:$0xff]   ;;  %v3200_v5 = vld [vmem:[#allocation2 + $0x1a0] sm:$0xff]   ;;  %v3171_v6 = vld [vmem:[#allocation2 + $0x98] sm:$0xff]  }
  0x66   : > { %v3566_v27 = vor.u32 %v708_v25, %v707_v22  ;;  %v363_v35 = vor.u32 %v361_v19, %v359_v15  ;;  %v960_v43 = vrot.slane %v357_v13, 3  ;;  %2855 = vmatpush3.bf16.msra.mxu0 %v3180_v36  ;;  %v1085_v56 = vrot.slane %v3558_v9, 3  ;;  %v3202_v7 = vld [vmem:[#allocation2 + $0x1a8] sm:$0xff]   ;;  %v3204_v10 = vld [vmem:[#allocation2 + $0x1b0] sm:$0xff]   ;;  %v3175_v14 = vld [vmem:[#allocation2 + $0xb8] sm:$0xff]  }
  0x67   : > { %2777 = vmatpush3.bf16.msra.mxu1 %v3153_v3  ;;  %v360_v18 = vsel %vm348_vm0, %v355_v16, %v359_v15  ;;  %v958_v42 = vor.u32 %v957_v39, %v956_v37  ;;  %2856 = vmatprep.subr.bf16.mxu0 %v3182_v41  ;;  %v580_v58 = vrot.slane %v3556_v8, 1  ;;  %v581_v59 = vrot.slane %v3558_v9, 1  ;;  %v3198_v3 = vld [vmem:[#allocation2 + $0x198] sm:$0xff]   ;;  %v3173_v11 = vld [vmem:[#allocation2 + $0xa8] sm:$0xff]   ;;  %v3174_v13 = vld [vmem:[#allocation2 + $0xb0] sm:$0xff]  }
  0x68   : > { %2778 = vmatprep.subr.bf16.mxu1 %v3154_v12  ;;  %2786 = vmatprep.mubr.bf16.mxu1 %v360_v18  ;;  %v3571_v30 = vsel %vm703_vm1, %v706_v24, %v3566_v27  ;;  %v3577_v45 = vor.u32 %v960_v43, %v959_v40  ;;  %v1086_v62 = vsel %vm1083_vm4, %v1084_v54, %v1085_v56  ;;  %v3177_v15 = vld [vmem:[#allocation2 + $0xc0] sm:$0xff]   ;;  %v3179_v16 = vld [vmem:[#allocation2 + $0xc8] sm:$0xff]   ;;  %v3183_v18 = vld [vmem:[#allocation2 + $0xd8] sm:$0xff]  }
  0x69   : > { %v582_v2 = vsel %vm579_vm3, %v580_v58, %v581_v59  ;;  %v3185_v19 = vld [vmem:[#allocation2 + $0xe0] sm:$0xff]   ;;  %v3187_v20 = vld [vmem:[#allocation2 + $0xe8] sm:$0xff]   ;;  %v3189_v21 = vld [vmem:[#allocation2 + $0xf0] sm:$0xff]  }
  0x6a   : > { %2857 = vmatpush3.bf16.msra.mxu0 %v3182_v41  ;;  %v3586_v63 = vsel %vm955_vm5, %v958_v42, %v3577_v45  ;;  %v3193_v22 = vld [vmem:[#allocation2 + $0x140] sm:$0xff]   ;;  %v3197_v24 = vld [vmem:[#allocation2 + $0x150] sm:$0xff]   ;;  %v3199_v25 = vld [vmem:[#allocation2 + $0x158] sm:$0xff]  }
  0x6b   : > { %2779 = vmatpush3.bf16.msra.mxu1 %v3154_v12  ;;  %2858 = vmatprep.subr.bf16.mxu0 %v3184_v46  ;;  %v3206_v12 = vld [vmem:[#allocation2 + $0x1b8] sm:$0xff]   ;;  %v3201_v26 = vld [vmem:[#allocation2 + $0x160] sm:$0xff]   ;;  %v3209_v31 = vld [vmem:[#allocation4 + $0x8] sm:$0xff]  }
  0x6c   : > { %2780 = vmatprep.subr.bf16.mxu1 %v3155_v17  ;;  %v3210_v32 = vld [vmem:[#allocation4 + $0x40] sm:$0xff]   ;;  %v3211_v34 = vld [vmem:[#allocation4 + $0x10] sm:$0xff]   ;;  %v3213_v36 = vld [vmem:[#allocation4 + $0x18] sm:$0xff]  }
  0x6d   : > { %v3215_v37 = vld [vmem:[#allocation4 + $0x20] sm:$0xff]   ;;  %v3217_v40 = vld [vmem:[#allocation4 + $0x28] sm:$0xff]  }
  0x6e   : > { %2859 = vmatpush3.bf16.msra.mxu0 %v3184_v46  ;;  %v3220_v46 = vld [vmem:[#allocation4 + $0x68] sm:$0xff]  }
  0x6f   : > { %2781 = vmatpush3.bf16.msra.mxu1 %v3155_v17  ;;  %2860 = vmatprep.subr.bf16.mxu0 %v3186_v48  ;;  %v3181_v17 = vld [vmem:[#allocation2 + $0xd0] sm:$0xff]  }
  0x70   : > { %2782 = vmatprep.subr.bf16.mxu1 %v3156_v23 }
  0x72   : > { %2861 = vmatpush3.bf16.msra.mxu0 %v3186_v48  ;;  %v3222_v48 = vld [vmem:[#allocation4 + $0x70] sm:$0xff]  }
  0x73   : > { %2783 = vmatpush3.bf16.msra.mxu1 %v3156_v23  ;;  %2862 = vmatprep.subr.bf16.mxu0 %v3188_v50  ;;  %v3195_v23 = vld [vmem:[#allocation2 + $0x148] sm:$0xff]  }
  0x74   : > { %2784 = vmatprep.subr.bf16.mxu1 %v3157_v29 }
  0x76   : > { %2863 = vmatpush3.bf16.msra.mxu0 %v3188_v50  ;;  %v3224_v50 = vld [vmem:[#allocation4 + $0x78] sm:$0xff]  }
  0x77   : > { %2785 = vmatpush3.bf16.msra.mxu1 %v3157_v29  ;;  %2864 = vmatprep.subr.bf16.mxu0 %v3190_v52  ;;  %v3205_v29 = vld [vmem:[#allocation2 + $0x170] sm:$0xff]  }
  0x78   : > { %2790 = vmatprep.subr.bf16.mxu1 %v3160_v33 }
  0x7a   : > { %2787 = vmatmul.mubr.bf16.vlgmr.msra.gmra.mrb[0].mxu1 %v363_v35  ;;  %2865 = vmatpush3.bf16.msra.mxu0 %v3190_v52  ;;  %v3214_v35 = vld [vmem:[#allocation4 + $0x50] sm:$0xff]  }
  0x7b   : > { %2791 = vmatpush3.bf16.msra.mxu1 %v3160_v33  ;;  %2806 = vmatprep.mubr.bf16.mxu1 %v3556_v8  ;;  %v3172_v8 = vld [vmem:[#allocation2 + $0xa0] sm:$0xff]   ;;  %v3212_v33 = vld [vmem:[#allocation4 + $0x48] sm:$0xff]  }
  0x7c   : > { %2792 = vmatprep.subr.bf16.mxu1 %v3161_v38  ;;  %2890 = vmatprep.subr.bf16.mxu0 %v3192_v55 }
  0x7d   : > { %2867 = vmatmul.mubr.bf16.vlgmr.msra.gmra.mrb[0].mxu0 %v833_v28  ;;  %v3203_v28 = vld [vmem:[#allocation2 + $0x168] sm:$0xff]  }
  0x7e   : > { %2891 = vmatpush3.bf16.msra.mxu0 %v3192_v55  ;;  %2906 = vmatprep.mubr.bf16.mxu0 %v1086_v62 }
  0x7f   : > { %2793 = vmatpush3.bf16.msra.mxu1 %v3161_v38  ;;  %2892 = vmatprep.subr.bf16.mxu0 %v3194_v60  ;;  %v3216_v38 = vld [vmem:[#allocation4 + $0x58] sm:$0xff]  }
  0x80   : > { %2794 = vmatprep.subr.bf16.mxu1 %v3162_v44 }
  0x82   : > { %2893 = vmatpush3.bf16.msra.mxu0 %v3194_v60 }
  0x83   : > { %2795 = vmatpush3.bf16.msra.mxu1 %v3162_v44  ;;  %2894 = vmatprep.subr.bf16.mxu0 %v3196_v0  ;;  %v3218_v44 = vld [vmem:[#allocation4 + $0x60] sm:$0xff]  }
  0x84   : > { %2796 = vmatprep.subr.bf16.mxu1 %v3163_v47 }
  0x86   : > { %2895 = vmatpush3.bf16.msra.mxu0 %v3196_v0 }
  0x87   : > { %2797 = vmatpush3.bf16.msra.mxu1 %v3163_v47  ;;  %2896 = vmatprep.subr.bf16.mxu0 %v3198_v3  ;;  %v3221_v47 = vld [vmem:[#allocation4 + $0x38] sm:$0xff]  }
  0x88   : > { %2798 = vmatprep.subr.bf16.mxu1 %v3164_v49 }
  0x8a   : > { %2897 = vmatpush3.bf16.msra.mxu0 %v3198_v3 }
  0x8b   : > { %2799 = vmatpush3.bf16.msra.mxu1 %v3164_v49  ;;  %2898 = vmatprep.subr.bf16.mxu0 %v3200_v5  ;;  %v3602_v49 = vld [vmem:[#allocation4 + $0xc0] sm:$0xff]  }
  0x8c   : > { %2800 = vmatprep.subr.bf16.mxu1 %v3165_v51 }
  0x8e   : > { %2899 = vmatpush3.bf16.msra.mxu0 %v3200_v5 }
  0x8f   : > { %2801 = vmatpush3.bf16.msra.mxu1 %v3165_v51  ;;  %2900 = vmatprep.subr.bf16.mxu0 %v3202_v7  ;;  %v3605_v51 = vld [vmem:[#allocation4 + $0x80] sm:$0xff]  }
  0x90   : > { %2802 = vmatprep.subr.bf16.mxu1 %v3166_v53 }
  0x92   : > { %2901 = vmatpush3.bf16.msra.mxu0 %v3202_v7 }
  0x93   : > { %2803 = vmatpush3.bf16.msra.mxu1 %v3166_v53  ;;  %2902 = vmatprep.subr.bf16.mxu0 %v3204_v10 }
  0x94   : > { %2804 = vmatprep.subr.bf16.mxu1 %v3167_v57 }
  0x96   : > { %2903 = vmatpush3.bf16.msra.mxu0 %v3204_v10 }
  0x97   : > { %2805 = vmatpush3.bf16.msra.mxu1 %v3167_v57  ;;  %2904 = vmatprep.subr.bf16.mxu0 %v3206_v12 }
  0x98   : > { %2810 = vmatprep.subr.bf16.mxu1 %v3168_v61 }
  0x9a   : > { %2807 = vmatmul.mubr.bf16.vlgmr.msra.gmra.mrb[4].mxu1 %v3558_v9  ;;  %2905 = vmatpush3.bf16.msra.mxu0 %v3206_v12  ;;  %v3191_v9 = vld [vmem:[#allocation2 + $0xf8] sm:$0xff]  }
  0x9b   : > { %2811 = vmatpush3.bf16.msra.mxu1 %v3168_v61  ;;  %2826 = vmatprep.mubr.bf16.mxu1 %v582_v2 }
  0x9c   : > { %2812 = vmatprep.subr.bf16.mxu1 %v3169_v1 }
  0x9d   : > { %2907 = vmatmul.mubr.bf16.vlgmr.msra.gmra.mrb[4].mxu0 %v1085_v56 }
  0x9f   : > { %2813 = vmatpush3.bf16.msra.mxu1 %v3169_v1 }
  0xa0   : > { %2814 = vmatprep.subr.bf16.mxu1 %v3170_v4 }
  0xa3   : > { %2815 = vmatpush3.bf16.msra.mxu1 %v3170_v4 }
  0xa4   : > { %2816 = vmatprep.subr.bf16.mxu1 %v3171_v6 }
  0xa7   : > { %2817 = vmatpush3.bf16.msra.mxu1 %v3171_v6 }
  0xa8   : > { %2818 = vmatprep.subr.bf16.mxu1 %v3172_v8 }
  0xab   : > { %2819 = vmatpush3.bf16.msra.mxu1 %v3172_v8 }
  0xac   : > { %2820 = vmatprep.subr.bf16.mxu1 %v3173_v11 }
  0xaf   : > { %2821 = vmatpush3.bf16.msra.mxu1 %v3173_v11 }
  0xb0   : > { %2822 = vmatprep.subr.bf16.mxu1 %v3174_v13 }
  0xb3   : > { %2823 = vmatpush3.bf16.msra.mxu1 %v3174_v13 }
  0xb4   : > { %2824 = vmatprep.subr.bf16.mxu1 %v3175_v14 }
  0xb7   : > { %2825 = vmatpush3.bf16.msra.mxu1 %v3175_v14 }
  0xb8   : > { %2830 = vmatprep.subr.bf16.mxu1 %v3177_v15 }
  0xba   : > { %2827 = vmatmul.mubr.bf16.vlgmr.msra.gmra.mrb[8].mxu1 %v581_v59 }
  0xbb   : > { %2831 = vmatpush3.bf16.msra.mxu1 %v3177_v15  ;;  %2846 = vmatprep.mubr.bf16.mxu1 %v3571_v30  ;;  %v3208_v30 = vld [vmem:[#allocation4] sm:$0xff]  }
  0xbc   : > { %2832 = vmatprep.subr.bf16.mxu1 %v3179_v16  ;;  %2930 = vmatprep.subr.bf16.mxu0 %v3208_v30 }
  0xbd   : > { %2931 = vmatpush3.bf16.msra.mxu0 %v3208_v30 }
  0xbe   : > { %2932 = vmatprep.subr.bf16.mxu0 %v3209_v31 }
  0xbf   : > { %2833 = vmatpush3.bf16.msra.mxu1 %v3179_v16 }
  0xc0   : > { %2834 = vmatprep.subr.bf16.mxu1 %v3181_v17 }
  0xc1   : > { %2933 = vmatpush3.bf16.msra.mxu0 %v3209_v31 }
  0xc2   : > { %2934 = vmatprep.subr.bf16.mxu0 %v3211_v34 }
  0xc3   : > { %2835 = vmatpush3.bf16.msra.mxu1 %v3181_v17 }
  0xc4   : > { %2836 = vmatprep.subr.bf16.mxu1 %v3183_v18 }
  0xc5   : > { %2935 = vmatpush3.bf16.msra.mxu0 %v3211_v34 }
  0xc6   : > { %2936 = vmatprep.subr.bf16.mxu0 %v3213_v36 }
  0xc7   : > { %2837 = vmatpush3.bf16.msra.mxu1 %v3183_v18 }
  0xc8   : > { %2838 = vmatprep.subr.bf16.mxu1 %v3185_v19 }
  0xc9   : > { %2937 = vmatpush3.bf16.msra.mxu0 %v3213_v36 }
  0xca   : > { %2938 = vmatprep.subr.bf16.mxu0 %v3215_v37 }
  0xcb   : > { %2839 = vmatpush3.bf16.msra.mxu1 %v3185_v19 }
  0xcc   : > { %2840 = vmatprep.subr.bf16.mxu1 %v3187_v20 }
  0xcd   : > { %2939 = vmatpush3.bf16.msra.mxu0 %v3215_v37 }
  0xce   : > { %2940 = vmatprep.subr.bf16.mxu0 %v3217_v40 }
  0xcf   : > { %2841 = vmatpush3.bf16.msra.mxu1 %v3187_v20 }
  0xd0   : > { %2842 = vmatprep.subr.bf16.mxu1 %v3189_v21 }
  0xd1   : > { %2941 = vmatpush3.bf16.msra.mxu0 %v3217_v40 }
  0xd3   : > { %2843 = vmatpush3.bf16.msra.mxu1 %v3189_v21  ;;  %v1202_v21 = vlaneseq }
  0xd4   : > { %2844 = vmatprep.subr.bf16.mxu1 %v3191_v9 }
  0xd7   : > { %2845 = vmatpush3.bf16.msra.mxu1 %v3191_v9  ;;  %v3608_v9 = vshrl.u32 %v1202_v21, 7  ;;  %v3239_v21 = vld [vmem:[#allocation4 + $0xb8] sm:$0xff]  }
  0xd8   : > { %2870 = vmatprep.subr.bf16.mxu1 %v3193_v22 }
  0xda   : > { %2847 = vmatmul.mubr.bf16.vlgmr.msra.gmra.mrb[12].mxu1 %v3566_v27  ;;  %v3207_v27 = vld [vmem:[#allocation2 + $0x178] sm:$0xff]  }
  0xdb   : > { %2871 = vmatpush3.bf16.msra.mxu1 %v3193_v22  ;;  %2886 = vmatprep.mubr.bf16.mxu1 %v3586_v63  ;;  %v3611_v22 = vadd.s32 16, %v3608_v9 }
  0xdc   : > { %2872 = vmatprep.subr.bf16.mxu1 %v3195_v23 }
  0xdf   : > { %2873 = vmatpush3.bf16.msra.mxu1 %v3195_v23 }
  0xe0   : > { %2874 = vmatprep.subr.bf16.mxu1 %v3197_v24 }
  0xe3   : > { %2875 = vmatpush3.bf16.msra.mxu1 %v3197_v24 }
  0xe4   : > { %2876 = vmatprep.subr.bf16.mxu1 %v3199_v25 }
  0xe7   : > { %2877 = vmatpush3.bf16.msra.mxu1 %v3199_v25 }
  0xe8   : > { %2878 = vmatprep.subr.bf16.mxu1 %v3201_v26 }
  0xeb   : > { %2879 = vmatpush3.bf16.msra.mxu1 %v3201_v26  ;;  %v2518_v26 = vld [vmem:[%s3732_s5] ss:$0 sm:$0xff] }
  0xec   : > { %2880 = vmatprep.subr.bf16.mxu1 %v3203_v28 }
  0xef   : > { %2881 = vmatpush3.bf16.msra.mxu1 %v3203_v28 }
  0xf0   : > { %2882 = vmatprep.subr.bf16.mxu1 %v3205_v29 }
  0xf3   : > { %2883 = vmatpush3.bf16.msra.mxu1 %v3205_v29 }
  0xf4   : > { %2884 = vmatprep.subr.bf16.mxu1 %v3207_v27 }
  0xf7   : > { %2885 = vmatpush3.bf16.msra.mxu1 %v3207_v27  ;;  %v1209_v27 = vadd.s32 4294967291, %v3611_v22 }
  0xf8   : > { %2910 = vmatprep.subr.bf16.mxu1 %v3210_v32 }
  0xf9   : > { %vm1217_vm6 = vcmp.lt.s32.totalorder %v1209_v27, 16  ;;  %v3246_v27 = vld [vmem:[#allocation4 + $0x130] sm:$0xff]  }
  0xfa   : > { %2887 = vmatmul.mubr.bf16.vlgmr.msra.gmra.mrb[16].mxu1 %v3577_v45  ;;  %v3219_v45 = vld [vmem:[#allocation4 + $0x30] sm:$0xff]   ;;  %vm2538_vm10 = vmpackc.low %vm3389_vm8, %vm1217_vm6 }
  0xfb   : > { %2911 = vmatpush3.bf16.msra.mxu1 %v3210_v32  ;;  %2942 = vmatprep.subr.bf16.mxu0 %v3219_v45  ;;  %v1207_v32 = vadd.s32 4294967291, %v3608_v9 }
  0xfc   : > { %2912 = vmatprep.subr.bf16.mxu1 %v3212_v33  ;;  %2943 = vmatpush3.bf16.msra.mxu0 %v3219_v45 }
  0xfd   : > { %2944 = vmatprep.subr.bf16.mxu0 %v3221_v47  ;;  %vm1211_vm7 = vcmp.ge.s32.totalorder %v1207_v32, 0  ;;  %v3249_v32 = vld [vmem:[#allocation6 + $0x48] sm:$0xff]  }
  0xfe   : > { %vm2535_vm9 = vmpackc.low %vm3389_vm8, %vm1211_vm7 }
  0xff   : > { %2913 = vmatpush3.bf16.msra.mxu1 %v3212_v33 }
 0x100   : > { %2914 = vmatprep.subr.bf16.mxu1 %v3214_v35  ;;  %2945 = vmatpush3.bf16.msra.mxu0 %v3221_v47 }
 0x101   : > { %2970 = vmatprep.subr.bf16.mxu0 %v3602_v49 }
 0x103   : > { %2915 = vmatpush3.bf16.msra.mxu1 %v3214_v35 }
 0x104   : > { %2916 = vmatprep.subr.bf16.mxu1 %v3216_v38 }
 0x107   : > { %2917 = vmatpush3.bf16.msra.mxu1 %v3216_v38 }
 0x108   : > { %2918 = vmatprep.subr.bf16.mxu1 %v3218_v44 }
 0x10b   : > { %2919 = vmatpush3.bf16.msra.mxu1 %v3218_v44  ;;  %v3388_v44 = vmov 0.0  }
 0x10c   : > { %2920 = vmatprep.subr.bf16.mxu1 %v3220_v46 }
 0x10f   : > { %2921 = vmatpush3.bf16.msra.mxu1 %v3220_v46 }
 0x110   : > { %2922 = vmatprep.subr.bf16.mxu1 %v3222_v48 }
 0x113   : > { %2923 = vmatpush3.bf16.msra.mxu1 %v3222_v48 }
 0x114   : > { %2924 = vmatprep.subr.bf16.mxu1 %v3224_v50 }
 0x117   : > { %2925 = vmatpush3.bf16.msra.mxu1 %v3224_v50 }
 0x118   : > { %2950 = vmatprep.subr.bf16.mxu1 %v3605_v51 }
 0x14d   : > { %v2788_v39 = vpop.f32.mrb[0].mxu1 }
 0x14e   : > { %v448_v41 = vpop.f32.mrb[1].mxu1 }
 0x14f   : > { %v2789_v42 = vpop.f32.mrb[2].mxu1 }
 0x150   : > { %v451_v43 = vpop.f32.mrb[3].mxu1  ;;  %v2868_v52 = vpop.f32.mrb[0].mxu0 }
 0x151   : > { %v919_v53 = vpop.f32.mrb[1].mxu0 }
 0x152   : > { %v2869_v54 = vpop.f32.mrb[2].mxu0 }
 0x153   : > { %v922_v55 = vpop.f32.mrb[3].mxu0 }
 0x16d   : > { %v2808_v56 = vpop.f32.mrb[4].mxu1 }
 0x16e   : > { %v556_v57 = vadd.f32 %v2808_v56, %v2788_v39  ;;  %v547_v58 = vpop.f32.mrb[5].mxu1 }
 0x16f   : > { %v548_v59 = vadd.f32 %v547_v58, %v448_v41  ;;  %v2809_v60 = vpop.f32.mrb[6].mxu1 }
 0x170   : > { %v550_v61 = vpop.f32.mrb[7].mxu1  ;;  %v2908_v63 = vpop.f32.mrb[4].mxu0 }
 0x171   : > { %v551_v62 = vadd.f32 %v550_v61, %v451_v43  ;;  %v1171_v0 = vpop.f32.mrb[5].mxu0 }
 0x172   : > { %v2909_v1 = vpop.f32.mrb[6].mxu0 }
 0x173   : > { %v1174_v2 = vpop.f32.mrb[7].mxu0 }
 0x18d   : > { %v2828_v3 = vpop.f32.mrb[8].mxu1 }
 0x18e   : > { %v684_v4 = vadd.f32 %v2828_v3, %v556_v57  ;;  %v667_v5 = vpop.f32.mrb[9].mxu1 }
 0x18f   : > { %v682_v6 = vadd.f32 %v667_v5, %v548_v59  ;;  %v2829_v7 = vpop.f32.mrb[10].mxu1 }
 0x190   : > { %v670_v8 = vpop.f32.mrb[11].mxu1  ;;  %v3227_v7 = vld [vmem:[#allocation4 + $0xd0] sm:$0xff]  }
 0x191   : > { %v683_v10 = vadd.f32 %v670_v8, %v551_v62 }
 0x1ad   : > { %v2848_v11 = vpop.f32.mrb[12].mxu1 }
 0x1ae   : > { %v812_v12 = vadd.f32 %v2848_v11, %v684_v4  ;;  %v795_v13 = vpop.f32.mrb[13].mxu1  ;;  %v3228_v11 = vld [vmem:[#allocation4 + $0x88] sm:$0xff]  }
 0x1af   : > { %v810_v14 = vadd.f32 %v795_v13, %v682_v6  ;;  %v2849_v15 = vpop.f32.mrb[14].mxu1  ;;  %v3230_v13 = vld [vmem:[#allocation4 + $0x90] sm:$0xff]  }
 0x1b0   : > { %v936_v16 = vadd.f32 %v2868_v52, %v812_v12  ;;  %v798_v17 = vpop.f32.mrb[15].mxu1  ;;  %v3229_v12 = vld [vmem:[#allocation4 + $0xd8] sm:$0xff]  }
 0x1b1   : > { %v934_v18 = vadd.f32 %v919_v53, %v810_v14  ;;  %v811_v19 = vadd.f32 %v798_v17, %v683_v10  ;;  %v3225_v53 = vld [vmem:[#allocation4 + $0xc8] sm:$0xff]   ;;  %v3231_v14 = vld [vmem:[#allocation4 + $0xe0] sm:$0xff]   ;;  %v3232_v15 = vld [vmem:[#allocation4 + $0x98] sm:$0xff]  }
 0x1b2   : > { %v3234_v17 = vld [vmem:[#allocation4 + $0xa0] sm:$0xff]  }
 0x1b3   : > { %v935_v20 = vadd.f32 %v922_v55, %v811_v19  ;;  %v3237_v19 = vld [vmem:[#allocation4 + $0xf8] sm:$0xff]  }
 0x1cd   : > { %v2888_v23 = vpop.f32.mrb[16].mxu1 }
 0x1ce   : > { %v1064_v24 = vadd.f32 %v2888_v23, %v936_v16  ;;  %v1047_v25 = vpop.f32.mrb[17].mxu1  ;;  %v3233_v16 = vld [vmem:[#allocation4 + $0xe8] sm:$0xff]   ;;  %v3240_v23 = vld [vmem:[#allocation4 + $0x100] sm:$0xff]  }
 0x1cf   : > { %v1062_v28 = vadd.f32 %v1047_v25, %v934_v18  ;;  %v2889_v29 = vpop.f32.mrb[18].mxu1  ;;  %v3235_v18 = vld [vmem:[#allocation4 + $0xf0] sm:$0xff]  }
 0x1d0   : > { %v1188_v30 = vadd.f32 %v2908_v63, %v1064_v24  ;;  %v1050_v31 = vpop.f32.mrb[19].mxu1  ;;  %v3241_v24 = vld [vmem:[#allocation4 + $0x108] sm:$0xff]   ;;  %v3242_v25 = vld [vmem:[#allocation4 + $0x110] sm:$0xff]  }
 0x1d1   : > { %v1186_v33 = vadd.f32 %v1171_v0, %v1062_v28  ;;  %v1063_v34 = vadd.f32 %v1050_v31, %v935_v20  ;;  %v3238_v20 = vld [vmem:[#allocation4 + $0xb0] sm:$0xff]   ;;  %v3244_v28 = vld [vmem:[#allocation4 + $0x120] sm:$0xff]   ;;  %v3245_v29 = vld [vmem:[#allocation4 + $0x128] sm:$0xff]  }
 0x1d2   : > { %v1196_v35 = vadd.f32 %v2518_v26, %v1188_v30  ;;  %v3247_v30 = vld [vmem:[#allocation4 + $0x138] sm:$0xff]   ;;  %v3248_v31 = vld [vmem:[#allocation6 + $0x40] sm:$0xff]  }
 0x1d3   : > { %v1194_v36 = vadd.f32 %v2518_v26, %v1186_v33  ;;  %v1187_v37 = vadd.f32 %v1174_v2, %v1063_v34  ;;  %v3250_v33 = vld [vmem:[#allocation6 + $0x50] sm:$0xff]   ;;  %v3251_v34 = vld [vmem:[#allocation6 + $0x58] sm:$0xff]  }
 0x1d4   : > { %v1200_v38 = vmax.f32 %v1196_v35, 0.0  ;;  %v3252_v35 = vld [vmem:[#allocation6 + $0x60] sm:$0xff]  }
 0x1d5   : > { %v1198_v39 = vmax.f32 %v1194_v36, 0.0  ;;  %v1195_v40 = vadd.f32 %v2518_v26, %v1187_v37  ;;  %v3243_v26 = vld [vmem:[#allocation4 + $0x118] sm:$0xff]   ;;  %v3253_v36 = vld [vmem:[#allocation6 + $0x68] sm:$0xff]   ;;  %v3254_v37 = vld [vmem:[#allocation6 + $0x70] sm:$0xff]  }
 0x1d6   : > { %v1233_v41 = vsel %vm1217_vm6, %v1200_v38, 0.0  ;;  %v2539_v52 = vpack.c.bf16 %v3388_v44, %v1200_v38  ;;  %v3255_v38 = vld [vmem:[#allocation6 + $0x78] sm:$0xff]  }
 0x1d7   : > { %v1199_v42 = vmax.f32 %v1195_v40, 0.0  ;;  %v1231_v43 = vsel %vm1211_vm7, %v1198_v39, 0.0  ;;  %v3619_v45 = vpack.c.bf16 %v3388_v44, %v1233_v41 }
 0x1d9   : > { %v2536_v46 = vpack.c.bf16 %v1199_v42, %v1198_v39  ;;  %v1235_v47 = vpack.c.bf16 %v1199_v42, %v1231_v43  ;;  %v1278_v48 = vshll.u32 %v3619_v45, 16  ;;  %v1282_v50 = vshrl.u32 %v3619_v45, 16 }
 0x1da   : > { %v1499_v57 = vrot.slane %v3619_v45, 1  ;;  %v1745_v61 = vrot.slane %v3619_v45, 2 }
 0x1db   : > { %2946 = vmatprep.mubr.msk.bf16.mxu0 %vm2535_vm9, %v2536_v46  ;;  %v1271_v54 = vshrl.u32 %v1235_v47, 16  ;;  %v1273_v55 = vshll.u32 %v1235_v47, 16  ;;  %v1622_v56 = vrot.slane %v1282_v50, 1  ;;  %v1623_v58 = vrot.slane %v1278_v48, 2 }
 0x1dc   : > { %2947 = vmatmul.mubr.msk.bf16.vlgmr.msra.gmra.mrb[8].mxu0 %vm2538_vm10, %v2539_v52  ;;  %v1498_v59 = vrot.slane %v1235_v47, 1  ;;  %v1744_v60 = vrot.slane %v1235_v47, 2  ;;  %v1280_v63 = vrot.slane %v1278_v48, 1 }
 0x1dd   : > { %2971 = vmatpush3.bf16.msra.mxu0 %v3602_v49  ;;  %v1275_v62 = vrot.slane %v1273_v55, 1  ;;  %v1619_v0 = vrot.slane %v1271_v54, 1  ;;  %v1620_v1 = vrot.slane %v1273_v55, 2  ;;  %v1624_v6 = vor.u32 %v1623_v58, %v1622_v56 }
 0x1de   : > { %2972 = vmatprep.subr.bf16.mxu0 %v3225_v53  ;;  %v1500_v2 = vsel %vm579_vm3, %v1498_v59, %v1499_v57  ;;  %v1746_v3 = vsel %vm831_vm2, %v1744_v60, %v1745_v61  ;;  %v1284_v10 = vor.u32 %v1282_v50, %v1280_v63 }
 0x1df   : > { %v1276_v4 = vor.u32 %v1275_v62, %v1271_v54  ;;  %v1621_v5 = vor.u32 %v1620_v1, %v1619_v0 }
 0x1e1   : > { %2973 = vmatpush3.bf16.msra.mxu0 %v3225_v53  ;;  %v1281_v49 = vsel %vm348_vm0, %v1276_v4, %v1280_v63  ;;  %v1625_v8 = vsel %vm703_vm1, %v1621_v5, %v1624_v6  ;;  %v1860_v5 = vadd.s32 4294967293, %v3611_v22 }
 0x1e2   : > { %2926 = vmatprep.mubr.bf16.mxu1 %v1281_v49  ;;  %2986 = vmatprep.mubr.bf16.mxu0 %v1625_v8  ;;  %v1858_v49 = vadd.s32 4294967293, %v3608_v9 }
 0x1e3   : > { %2927 = vmatmul.mubr.bf16.vlgmr.msra.gmra.mrb[20].mxu1 %v1284_v10  ;;  %2974 = vmatprep.subr.bf16.mxu0 %v3227_v7  ;;  %vm1866_vm12 = vcmp.lt.s32.totalorder %v1860_v5, 16  ;;  %v2591_v5 = vld [vmem:[%s3732_s5 + $0x4] ss:$0 sm:$0xff] }
 0x1e4   : > { %2951 = vmatpush3.bf16.msra.mxu1 %v3605_v51  ;;  %2966 = vmatprep.mubr.bf16.mxu1 %v1500_v2  ;;  %v3236_v51 = vld [vmem:[#allocation4 + $0xa8] sm:$0xff]   ;;  %vm1861_vm13 = vcmp.ge.s32.totalorder %v1858_v49, 0 }
 0x1e5   : > { %2975 = vmatpush3.bf16.msra.mxu0 %v3227_v7  ;;  %2952 = vmatprep.subr.bf16.mxu1 %v3228_v11 }
 0x1e6   : > { %2976 = vmatprep.subr.bf16.mxu0 %v3229_v12 }
 0x1e8   : > { %2953 = vmatpush3.bf16.msra.mxu1 %v3228_v11 }
 0x1e9   : > { %2977 = vmatpush3.bf16.msra.mxu0 %v3229_v12  ;;  %2954 = vmatprep.subr.bf16.mxu1 %v3230_v13 }
 0x1ea   : > { %2978 = vmatprep.subr.bf16.mxu0 %v3231_v14 }
 0x1ec   : > { %2955 = vmatpush3.bf16.msra.mxu1 %v3230_v13 }
 0x1ed   : > { %2979 = vmatpush3.bf16.msra.mxu0 %v3231_v14  ;;  %2956 = vmatprep.subr.bf16.mxu1 %v3232_v15 }
 0x1ee   : > { %2980 = vmatprep.subr.bf16.mxu0 %v3233_v16 }
 0x1f0   : > { %2957 = vmatpush3.bf16.msra.mxu1 %v3232_v15 }
 0x1f1   : > { %2981 = vmatpush3.bf16.msra.mxu0 %v3233_v16  ;;  %2958 = vmatprep.subr.bf16.mxu1 %v3234_v17 }
 0x1f2   : > { %2982 = vmatprep.subr.bf16.mxu0 %v3235_v18 }
 0x1f4   : > { %2959 = vmatpush3.bf16.msra.mxu1 %v3234_v17 }
 0x1f5   : > { %2983 = vmatpush3.bf16.msra.mxu0 %v3235_v18  ;;  %2960 = vmatprep.subr.bf16.mxu1 %v3236_v51 }
 0x1f6   : > { %2984 = vmatprep.subr.bf16.mxu0 %v3237_v19 }
 0x1f8   : > { %2961 = vmatpush3.bf16.msra.mxu1 %v3236_v51 }
 0x1f9   : > { %2985 = vmatpush3.bf16.msra.mxu0 %v3237_v19  ;;  %2962 = vmatprep.subr.bf16.mxu1 %v3238_v20 }
 0x1fa   : > { %3010 = vmatprep.subr.bf16.mxu0 %v3388_v44 }
 0x1fc   : > { %2963 = vmatpush3.bf16.msra.mxu1 %v3238_v20  ;;  %2987 = vmatmul.mubr.bf16.vlgmr.msra.gmra.mrb[12].mxu0 %v1624_v6 }
 0x1fd   : > { %2964 = vmatprep.subr.bf16.mxu1 %v3239_v21  ;;  %3011 = vmatpush3.bf16.msra.mxu0 %v3248_v31 }
 0x1fe   : > { %3012 = vmatprep.subr.bf16.mxu0 %v3388_v44  ;;  %3026 = vmatprep.mubr.msk.bf16.mxu0 %vm3390_vm11, %v3388_v44 }
 0x200   : > { %2965 = vmatpush3.bf16.msra.mxu1 %v3239_v21 }
 0x201   : > { %2990 = vmatprep.subr.bf16.mxu1 %v3240_v23  ;;  %3013 = vmatpush3.bf16.msra.mxu0 %v3249_v32 }
 0x202   : > { %3014 = vmatprep.subr.bf16.mxu0 %v3388_v44 }
 0x203   : > { %2967 = vmatmul.mubr.bf16.vlgmr.msra.gmra.mrb[24].mxu1 %v1499_v57 }
 0x204   : > { %2991 = vmatpush3.bf16.msra.mxu1 %v3240_v23  ;;  %3006 = vmatprep.mubr.bf16.mxu1 %v1746_v3  ;;  %v2565_v3 = vld [vmem:[%s3732_s5 + $0x1] ss:$0 sm:$0xff] }
 0x205   : > { %2992 = vmatprep.subr.bf16.mxu1 %v3241_v24  ;;  %3015 = vmatpush3.bf16.msra.mxu0 %v3250_v33 }
 0x206   : > { %3016 = vmatprep.subr.bf16.mxu0 %v3388_v44 }
 0x208   : > { %2993 = vmatpush3.bf16.msra.mxu1 %v3241_v24 }
 0x209   : > { %2994 = vmatprep.subr.bf16.mxu1 %v3242_v25  ;;  %3017 = vmatpush3.bf16.msra.mxu0 %v3251_v34 }
 0x20a   : > { %3018 = vmatprep.subr.bf16.mxu0 %v3388_v44 }
 0x20c   : > { %2995 = vmatpush3.bf16.msra.mxu1 %v3242_v25 }
 0x20d   : > { %2996 = vmatprep.subr.bf16.mxu1 %v3243_v26  ;;  %3019 = vmatpush3.bf16.msra.mxu0 %v3252_v35 }
 0x20e   : > { %3020 = vmatprep.subr.bf16.mxu0 %v3388_v44 }
 0x210   : > { %2997 = vmatpush3.bf16.msra.mxu1 %v3243_v26 }
 0x211   : > { %2998 = vmatprep.subr.bf16.mxu1 %v3244_v28  ;;  %3021 = vmatpush3.bf16.msra.mxu0 %v3253_v36 }
 0x212   : > { %3022 = vmatprep.subr.bf16.mxu0 %v3388_v44 }
 0x214   : > { %2999 = vmatpush3.bf16.msra.mxu1 %v3244_v28 }
 0x215   : > { %3000 = vmatprep.subr.bf16.mxu1 %v3245_v29  ;;  %3023 = vmatpush3.bf16.msra.mxu0 %v3254_v37  ;;  %v3256_v37 = vld [vmem:[#allocation6] sm:$0xff]  }
 0x216   : > { %3024 = vmatprep.subr.bf16.mxu0 %v3388_v44 }
 0x218   : > { %3001 = vmatpush3.bf16.msra.mxu1 %v3245_v29 }
 0x219   : > { %3002 = vmatprep.subr.bf16.mxu1 %v3246_v27  ;;  %3025 = vmatpush3.bf16.msra.mxu0 %v3255_v38 }
 0x21a   : > { %3030 = vmatprep.subr.bf16.mxu0 %v3388_v44 }
 0x21c   : > { %3003 = vmatpush3.bf16.msra.mxu1 %v3246_v27 }
 0x21d   : > { %3004 = vmatprep.subr.bf16.mxu1 %v3247_v30 }
 0x220   : > { %3005 = vmatpush3.bf16.msra.mxu1 %v3247_v30 }
 0x223   : > { %3007 = vmatmul.mubr.bf16.vlgmr.msra.gmra.mrb[28].mxu1 %v1745_v61 }
 0x2af   : > { %v2948_v39 = vpop.f32.mrb[8].mxu0 }
 0x2b0   : > { %v1465_v40 = vpop.f32.mrb[9].mxu0 }
 0x2b1   : > { %v2949_v41 = vpop.f32.mrb[10].mxu0 }
 0x2b2   : > { %v1468_v42 = vpop.f32.mrb[11].mxu0  ;;  %v3259_v41 = vld [vmem:[#allocation6 + $0x18] sm:$0xff]  }
 0x2b6   : > { %v2928_v43 = vpop.f32.mrb[20].mxu1 }
 0x2b7   : > { %v1474_v45 = vadd.f32 %v2948_v39, %v2928_v43  ;;  %v1369_v46 = vpop.f32.mrb[21].mxu1  ;;  %v3257_v39 = vld [vmem:[#allocation6 + $0x8] sm:$0xff]  }
 0x2b8   : > { %v1466_v47 = vadd.f32 %v1465_v40, %v1369_v46  ;;  %v2929_v48 = vpop.f32.mrb[22].mxu1  ;;  %v3258_v40 = vld [vmem:[#allocation6 + $0x10] sm:$0xff]   ;;  %v3261_v43 = vld [vmem:[#allocation6 + $0x28] sm:$0xff]   ;;  %v3263_v46 = vld [vmem:[#allocation6 + $0x38] sm:$0xff]  }
 0x2b9   : > { %v1372_v50 = vpop.f32.mrb[23].mxu1  ;;  %v3265_v48 = vld [vmem:[#allocation6 + $0x88] sm:$0xff]  }
 0x2ba   : > { %v1469_v52 = vadd.f32 %v1468_v42, %v1372_v50  ;;  %v3260_v42 = vld [vmem:[#allocation6 + $0x20] sm:$0xff]   ;;  %v3266_v50 = vld [vmem:[#allocation6 + $0x90] sm:$0xff]  }
 0x2cf   : > { %v2988_v53 = vpop.f32.mrb[12].mxu0 }
 0x2d0   : > { %v1710_v54 = vpop.f32.mrb[13].mxu0 }
 0x2d1   : > { %v2989_v55 = vpop.f32.mrb[14].mxu0 }
 0x2d2   : > { %v1713_v56 = vpop.f32.mrb[15].mxu0  ;;  %v3270_v55 = vld [vmem:[#allocation6 + $0xb0] sm:$0xff]  }
 0x2d6   : > { %v2968_v57 = vpop.f32.mrb[24].mxu1 }
 0x2d7   : > { %v1601_v58 = vadd.f32 %v2968_v57, %v1474_v45  ;;  %v1585_v59 = vpop.f32.mrb[25].mxu1  ;;  %v3262_v45 = vld [vmem:[#allocation6 + $0x30] sm:$0xff]   ;;  %v3272_v57 = vld [vmem:[%s3731_s4] sm:$0xff]  }
 0x2d8   : > { %v1599_v60 = vadd.f32 %v1585_v59, %v1466_v47  ;;  %v2969_v61 = vpop.f32.mrb[26].mxu1  ;;  %v3264_v47 = vld [vmem:[#allocation6 + $0x80] sm:$0xff]   ;;  %v3274_v59 = vld [vmem:[%s3731_s4 + $0x10] sm:$0xff]  }
 0x2d9   : > { %v1588_v62 = vpop.f32.mrb[27].mxu1  ;;  %v1726_v63 = vadd.f32 %v2988_v53, %v1601_v58  ;;  %v3268_v53 = vld [vmem:[#allocation6 + $0xa0] sm:$0xff]   ;;  %v3273_v58 = vld [vmem:[%s3731_s4 + $0x8] sm:$0xff]  }
 0x2da   : > { %v1600_v0 = vadd.f32 %v1588_v62, %v1469_v52  ;;  %v1724_v1 = vadd.f32 %v1710_v54, %v1599_v60  ;;  %v3267_v52 = vld [vmem:[#allocation6 + $0x98] sm:$0xff]   ;;  %v3269_v54 = vld [vmem:[#allocation6 + $0xa8] sm:$0xff]   ;;  %v3276_v61 = vld [vmem:[%s3731_s4 + $0x20] sm:$0xff]  }
 0x2db   : > { %v3275_v60 = vld [vmem:[%s3731_s4 + $0x18] sm:$0xff]   ;;  %v3277_v62 = vld [vmem:[%s3731_s4 + $0x28] sm:$0xff]  }
 0x2dc   : > { %v1725_v2 = vadd.f32 %v1713_v56, %v1600_v0  ;;  %v3271_v56 = vld [vmem:[#allocation6 + $0xb8] sm:$0xff]  }
 0x2dd   : > { %v3279_v0 = vld [vmem:[%s3731_s4 + $0x38] sm:$0xff]  }
 0x2f6   : > { %v3008_v4 = vpop.f32.mrb[28].mxu1 }
 0x2f7   : > { %v1847_v6 = vadd.f32 %v3008_v4, %v1726_v63  ;;  %v1831_v7 = vpop.f32.mrb[29].mxu1  ;;  %v3278_v63 = vld [vmem:[%s3731_s4 + $0x30] sm:$0xff]   ;;  %v2590_v4 = vld [vmem:[%s3732_s5 + $0x2] ss:$0 sm:$0xff] }
 0x2f8   : > { %v1845_v8 = vadd.f32 %v1831_v7, %v1724_v1  ;;  %v3009_v10 = vpop.f32.mrb[30].mxu1  ;;  %v3281_v1 = vld [vmem:[%s3550_s12 + $0x4] sm:$0xf] }
 0x2f9   : > { %v1854_v11 = vadd.f32 %v2565_v3, %v1847_v6  ;;  %v1834_v12 = vpop.f32.mrb[31].mxu1  ;;  %v3090_v6 = vadd.f32 %v2591_v5, %v2590_v4 }
 0x2fa   : > { %v1852_v13 = vadd.f32 %v2565_v3, %v1845_v8  ;;  %v1846_v14 = vadd.f32 %v1834_v12, %v1725_v2  ;;  %v3282_v2 = vld [vmem:[%s3550_s12 + $0x8] sm:$0xf] }
 0x2fb   : > { %v1857_v15 = vmax.f32 %v1854_v11, 0.0 }
 0x2fc   : > { %v1855_v16 = vmax.f32 %v1852_v13, 0.0  ;;  %v1853_v17 = vadd.f32 %v2565_v3, %v1846_v14  ;;  %v2592_v3 = vcombine.low %v3281_v1, %v3282_v2 }
 0x2fd   : > { %v1878_v18 = vsel %vm1866_vm12, %v1857_v15, 0.0 }
 0x2fe   : > { %v1880_v51 = vpack.c.bf16 %v1878_v18, %v1878_v18  ;;  %v1876_v19 = vsel %vm1861_vm13, %v1855_v16, 0.0  ;;  %v1856_v20 = vmax.f32 %v1853_v17, 0.0 }
 0x300   : > { %v1879_v22 = vpack.c.bf16 %v1856_v20, %v1876_v19  ;;  %v1923_v21 = vshrl.u32 %v1880_v51, 16  ;;  %v1926_v23 = vshll.u32 %v1880_v51, 16  ;;  %v2024_v29 = vrot.slane %v1880_v51, 1 }
 0x301   : > { %v2134_v30 = vrot.slane %v1880_v51, 2 }
 0x302   : > { %v1915_v24 = vshrl.u32 %v1879_v22, 16  ;;  %v1918_v9 = vshll.u32 %v1879_v22, 16  ;;  %v1925_v25 = vrot.slane %v1923_v21, 1  ;;  %v1928_v26 = vrot.slane %v1926_v23, 2 }
 0x303   : > { %v2023_v28 = vrot.slane %v1879_v22, 1  ;;  %v2133_v27 = vrot.slane %v1879_v22, 2 }
 0x304   : > { %v1917_v31 = vrot.slane %v1915_v24, 1  ;;  %v1920_v32 = vrot.slane %v1918_v9, 2  ;;  %v1929_v36 = vor.u32 %v1928_v26, %v1925_v25 }
 0x305   : > { %v2025_v33 = vsel %vm579_vm3, %v2023_v28, %v2024_v29  ;;  %v2135_v34 = vsel %vm831_vm2, %v2133_v27, %v2134_v30 }
 0x306   : > { %v1921_v35 = vor.u32 %v1920_v32, %v1917_v31 }
 0x308   : > { %v1930_v38 = vsel %vm703_vm1, %v1921_v35, %v1929_v36 }
 0x309   : > { %3027 = vmatmul.mubr.bf16.vlgmr.msra.gmra.mrb[16].mxu0 %v1930_v38 }
 0x30a   : > { %3031 = vmatpush3.bf16.msra.mxu0 %v3256_v37  ;;  %3046 = vmatprep.mubr.msk.bf16.mxu0 %vm3390_vm11, %v3388_v44 }
 0x30b   : > { %3032 = vmatprep.subr.bf16.mxu0 %v3388_v44 }
 0x30e   : > { %3033 = vmatpush3.bf16.msra.mxu0 %v3257_v39 }
 0x30f   : > { %3034 = vmatprep.subr.bf16.mxu0 %v3388_v44 }
 0x312   : > { %3035 = vmatpush3.bf16.msra.mxu0 %v3258_v40 }
 0x313   : > { %3036 = vmatprep.subr.bf16.mxu0 %v3388_v44 }
 0x316   : > { %3037 = vmatpush3.bf16.msra.mxu0 %v3259_v41 }
 0x317   : > { %3038 = vmatprep.subr.bf16.mxu0 %v3388_v44 }
 0x31a   : > { %3039 = vmatpush3.bf16.msra.mxu0 %v3260_v42 }
 0x31b   : > { %3040 = vmatprep.subr.bf16.mxu0 %v3388_v44 }
 0x31e   : > { %3041 = vmatpush3.bf16.msra.mxu0 %v3261_v43 }
 0x31f   : > { %3042 = vmatprep.subr.bf16.mxu0 %v3388_v44 }
 0x322   : > { %3043 = vmatpush3.bf16.msra.mxu0 %v3262_v45 }
 0x323   : > { %3044 = vmatprep.subr.bf16.mxu0 %v3388_v44 }
 0x326   : > { %3045 = vmatpush3.bf16.msra.mxu0 %v3263_v46 }
 0x327   : > { %3050 = vmatprep.subr.bf16.mxu0 %v3388_v44 }
 0x329   : > { %3047 = vmatmul.mubr.bf16.vlgmr.msra.gmra.mrb[16].mxu0 %v2025_v33 }
 0x32a   : > { %3051 = vmatpush3.bf16.msra.mxu0 %v3264_v47  ;;  %3066 = vmatprep.mubr.msk.bf16.mxu0 %vm3390_vm11, %v3388_v44 }
 0x32b   : > { %3052 = vmatprep.subr.bf16.mxu0 %v3388_v44 }
 0x32e   : > { %3053 = vmatpush3.bf16.msra.mxu0 %v3265_v48 }
 0x32f   : > { %3054 = vmatprep.subr.bf16.mxu0 %v3388_v44 }
 0x332   : > { %3055 = vmatpush3.bf16.msra.mxu0 %v3266_v50 }
 0x333   : > { %3056 = vmatprep.subr.bf16.mxu0 %v3388_v44 }
 0x336   : > { %3057 = vmatpush3.bf16.msra.mxu0 %v3267_v52 }
 0x337   : > { %3058 = vmatprep.subr.bf16.mxu0 %v3388_v44 }
 0x33a   : > { %3059 = vmatpush3.bf16.msra.mxu0 %v3268_v53 }
 0x33b   : > { %3060 = vmatprep.subr.bf16.mxu0 %v3388_v44 }
 0x33e   : > { %3061 = vmatpush3.bf16.msra.mxu0 %v3269_v54 }
 0x33f   : > { %3062 = vmatprep.subr.bf16.mxu0 %v3388_v44 }
 0x342   : > { %3063 = vmatpush3.bf16.msra.mxu0 %v3270_v55 }
 0x343   : > { %3064 = vmatprep.subr.bf16.mxu0 %v3388_v44 }
 0x346   : > { %3065 = vmatpush3.bf16.msra.mxu0 %v3271_v56 }
 0x347   : > { %3070 = vmatprep.subr.bf16.mxu0 %v3388_v44 }
 0x349   : > { %3067 = vmatmul.mubr.bf16.vlgmr.msra.gmra.mrb[16].mxu0 %v2135_v34 }
 0x34a   : > { %3071 = vmatpush3.bf16.msra.mxu0 %v3272_v57  ;;  %3086 = vmatprep.mubr.msk.bf16.mxu0 %vm3390_vm11, %v3388_v44 }
 0x34b   : > { %3072 = vmatprep.subr.bf16.mxu0 %v3388_v44 }
 0x34e   : > { %3073 = vmatpush3.bf16.msra.mxu0 %v3273_v58 }
 0x34f   : > { %3074 = vmatprep.subr.bf16.mxu0 %v3388_v44 }
 0x352   : > { %3075 = vmatpush3.bf16.msra.mxu0 %v3274_v59 }
 0x353   : > { %3076 = vmatprep.subr.bf16.mxu0 %v3388_v44 }
 0x356   : > { %3077 = vmatpush3.bf16.msra.mxu0 %v3275_v60 }
 0x357   : > { %3078 = vmatprep.subr.bf16.mxu0 %v3388_v44 }
 0x35a   : > { %3079 = vmatpush3.bf16.msra.mxu0 %v3276_v61 }
 0x35b   : > { %3080 = vmatprep.subr.bf16.mxu0 %v3388_v44 }
 0x35e   : > { %3081 = vmatpush3.bf16.msra.mxu0 %v3277_v62 }
 0x35f   : > { %3082 = vmatprep.subr.bf16.mxu0 %v3388_v44 }
 0x362   : > { %3083 = vmatpush3.bf16.msra.mxu0 %v3278_v63 }
 0x363   : > { %3084 = vmatprep.subr.bf16.mxu0 %v3388_v44 }
 0x366   : > { %3085 = vmatpush3.bf16.msra.mxu0 %v3279_v0 }
 0x369   : > { %3087 = vmatmul.mubr.bf16.vlgmr.msra.gmra.mrb[16].mxu0 %v2592_v3 }
 0x43c   : > { %v2338_v7 = vpop.f32.mrb[16].mxu0 }
 0x43d   : > { %v3091_v49 = vadd.f32 %v3090_v6, %v2338_v7  ;;  %v3088_v8 = vpop.f32.mrb[17].mxu0 }
 0x43e   : > { %v2341_v10 = vpop.f32.mrb[18].mxu0 }
 0x43f   : > { %v3093_v44 = vadd.f32 %v3090_v6, %v2341_v10  ;;  %v3089_v11 = vpop.f32.mrb[19].mxu0  ;;  %v2347_v12 = vmax.f32 %v3091_v49, 0.0 }
 0x441   : > { %v2348_v13 = vmax.f32 %v3093_v44, 0.0 }
 0x443   : > { %v2612_v14 = vpack.c.bf16 %v2348_v13, %v2347_v12 }
 0x445   : > { %2613 = vst [vmem:[%s295_s25] sm:$0xff] %v2612_v14  }
 0x446 PF: > { %s18_s21 = sadd.s32 1, %s3381_s21  }
 0x447   : > { %p15_p5 = scmp.ge.s32.totalorder %s18_s21, 4  }
 0x449   :  { %17 = sbr.rel (!%p15_p5) target bundleno = 2 (0x2), region = 99 }
 0x450   :  { %2380 = vsyncpa [#allocation3], 1 }
 0x451   :  { %2382 = vsyncpa [#allocation3 + $0x1], 1 }
 0x452   :  { %2383 = vsyncpa [#allocation5], 1 }

</bundles_post_ra>
